<compile_context>
chip_gen: v7x
topology: tpu7x:2x2x1
jax: 0.10.0
libtpu: 0.0.40
codegen_flags: <defaults>
</compile_context>

<pallas_src>
import jax
import jax.numpy as jnp
import numpy as np
from jax.experimental import pallas as pl
from jax.experimental.pallas import tpu as pltpu

# -------- model dims --------
B = 2            # batch
L = 3            # context_length (module hard-codes 3 via the [2,:,:] index)
T = 30           # tokens per candidate answer (assert answers.size(2) == 30)
D_FC7 = 4096     # fc7 feature size (nn.Linear(4096, d_hidden))
H = 128          # d_hidden == d_word
VOCAB = 128      # vocab_len of the answer embedding
M = B * L        # flattened context rows (6)
TK = 2048        # K-chunk of the streamed fc7 weight -> grid = (2,)


# =========================  single fused kernel  =============================
def fused_kernel(x_ref, w_ref, b_lin_ref, wih_ref, whh_ref, b_lstm_ref,
                 emb_ref, ans_ref, o_ref, acc_ref, cnt_ref):
    k = pl.program_id(0)

    @pl.when(k == 0)
    def _init():
        acc_ref[...] = jnp.zeros_like(acc_ref)
        # Hoisted answer one-hot counts (pure VPU/XLU work): runs at k=0 so it hides under
        # the DMA of the second w_lin chunk instead of sitting on the epilogue tail.
        m_rows, n_tok = ans_ref.shape
        vocab = cnt_ref.shape[1]
        ans = ans_ref[...]                                               # (M, T) int32
        vid = jax.lax.broadcasted_iota(jnp.int32, (m_rows, n_tok, vocab), 2)
        cnt_ref[...] = jnp.sum((ans[:, :, None] == vid).astype(jnp.float32), axis=1)

    # Streamed fc7 projection: bf16 operands (x cast per-chunk in VMEM), f32 accumulation.
    acc_ref[...] += jnp.dot(x_ref[...].astype(jnp.bfloat16), w_ref[...],
                            preferred_element_type=jnp.float32)

    @pl.when(k == pl.num_programs(0) - 1)
    def _epilogue():
        bsz, ctx_len = o_ref.shape
        hdim = acc_ref.shape[1]

        # ---- Linear bias + ReLU ----
        lin = jnp.maximum(acc_ref[...] + b_lin_ref[...], 0.0)            # (M, H) f32

        # ---- LSTM over L steps; input projection hoisted out of the recurrence ----
        gx = jnp.dot(lin.astype(jnp.bfloat16), wih_ref[...],
                     preferred_element_type=jnp.float32) + b_lstm_ref[...]   # (M, 4H) f32
        h = jnp.zeros((bsz, hdim), jnp.float32)
        c = jnp.zeros((bsz, hdim), jnp.float32)
        for t in range(ctx_len):                     # static unroll, seq_len == 3
            # torch .view(L, B, H): row t*B + j == (timestep t, lstm-batch j)
            g = gx[t * bsz:(t + 1) * bsz, :] + jnp.dot(
                h.astype(jnp.bfloat16), whh_ref[...],
                preferred_element_type=jnp.float32)
            i_g = jax.nn.sigmoid(g[:, 0 * hdim:1 * hdim])   # PyTorch gate order: i, f, g, o
            f_g = jax.nn.sigmoid(g[:, 1 * hdim:2 * hdim])
            g_g = jnp.tanh(g[:, 2 * hdim:3 * hdim])
            o_g = jax.nn.sigmoid(g[:, 3 * hdim:4 * hdim])
            c = f_g * c + i_g * g_g                  # gate/cell math kept in f32 (v5e friendly)
            h = o_g * jnp.tanh(c)
        ctx = h                                       # context_fc7_rep_all[2,:,:]  (B, H)

        # ---- answer score from pre-computed counts; emb is pre-transposed to (H, VOCAB) ----
        # cemb[b, v] = ctx[b] . emb[v]
        cemb = jnp.dot(ctx.astype(jnp.bfloat16), emb_ref[...],
                       preferred_element_type=jnp.float32)                # (B, VOCAB)
        counts = cnt_ref[...].reshape(bsz, ctx_len, -1)                   # (B, L, VOCAB)
        # scores[b,l] = sum_v counts[b,l,v] * cemb[b,v] == ctx[b] . sum_t emb[ans[b,l,t]]
        scores = jnp.sum(counts * cemb[:, None, :], axis=2)               # (B, L)

        # ---- softmax over the L candidate answers ----
        mx = jnp.max(scores, axis=1, keepdims=True)
        e = jnp.exp(scores - mx)
        o_ref[...] = e / jnp.sum(e, axis=1, keepdims=True)


# ==============================  parameters  =================================
def init_params(key):
    ks = jax.random.split(key, 5)
    return {
        # nn.Linear(4096, H): stored (in, out), bf16 -> halves the dominant HBM read
        "w_lin": (0.02 * jax.random.normal(ks[0], (D_FC7, H), jnp.float32)).astype(jnp.bfloat16),
        "b_lin": jnp.zeros((1, H), jnp.float32),
        # nn.LSTM(H, H, 1): (in, 4H) layouts, bf16; bias is b_ih + b_hh combined (f32)
        "w_ih": (0.1 * jax.random.normal(ks[1], (H, 4 * H), jnp.float32)).astype(jnp.bfloat16),
        "w_hh": (0.1 * jax.random.normal(ks[2], (H, 4 * H), jnp.float32)).astype(jnp.bfloat16),
        "b_lstm": 0.01 * jax.random.normal(ks[3], (1, 4 * H), jnp.float32),
        # nn.Embedding(vocab_len, d_word), pre-transposed to (H, VOCAB) and stored bf16
        "emb_hv": (0.05 * jax.random.normal(ks[4], (VOCAB, H), jnp.float32)).T.astype(jnp.bfloat16),
    }


# ==========================  full forward pass  ==============================
def image_only_network_forward(in_context_fc7, in_answers, in_a_mask, params):
    bsz, ctx_len, _ = in_context_fc7.shape
    tok = in_answers.shape[2]
    del in_a_mask  # computed but never applied in the reference PyTorch forward

    # Free reshapes only (no cast, no pad, no staged HBM copy): the f32 features are streamed
    # directly and cast to bf16 per-chunk inside the kernel.
    x = in_context_fc7.reshape(bsz * ctx_len, D_FC7)                    # (6, 4096) f32
    ans = in_answers.reshape(bsz * ctx_len, tok).astype(jnp.int32)      # (6, 30)   int32

    grid = (D_FC7 // TK,)   # 2 reduction steps: enough to overlap DMA, minimal step overhead
    # TODO(synk): on v7x this single-sample call uses one of the two TensorCores; with a larger
    # sample batch, add a leading "parallel" grid axis over sample blocks to use both cores.
    return pl.pallas_call(
        fused_kernel,
        out_shape=jax.ShapeDtypeStruct((bsz, ctx_len), jnp.float32),
        grid_spec=pltpu.PrefetchScalarGridSpec(
            num_scalar_prefetch=0,
            grid=grid,
            in_specs=[
                pl.BlockSpec((bsz * ctx_len, TK), lambda k: (0, k)),     # x (f32) streamed over K
                pl.BlockSpec((TK, H), lambda k: (k, 0)),                 # w_lin (bf16) streamed over K
                pl.BlockSpec((1, H), lambda k: (0, 0)),                  # b_lin (f32)
                pl.BlockSpec((H, 4 * H), lambda k: (0, 0)),              # w_ih (bf16)
                pl.BlockSpec((H, 4 * H), lambda k: (0, 0)),              # w_hh (bf16)
                pl.BlockSpec((1, 4 * H), lambda k: (0, 0)),              # b_lstm (f32)
                pl.BlockSpec((H, VOCAB), lambda k: (0, 0)),              # emb (H, VOCAB) bf16
                pl.BlockSpec((bsz * ctx_len, tok), lambda k: (0, 0)),    # answers (B*L, 30) int32
            ],
            out_specs=pl.BlockSpec((bsz, ctx_len), lambda k: (0, 0)),
            scratch_shapes=[
                pltpu.VMEM((bsz * ctx_len, H), jnp.float32),             # fc7-matmul accumulator
                pltpu.VMEM((bsz * ctx_len, VOCAB), jnp.float32),         # hoisted answer counts
            ],
        ),
        compiler_params=pltpu.CompilerParams(
            dimension_semantics=("arbitrary",)),                          # K is a reduction axis
    )(x, params["w_lin"], params["b_lin"], params["w_ih"], params["w_hh"],
      params["b_lstm"], params["emb_hv"], ans)


# ==================  pure-JAX reference (faithful to torch)  =================
def reference_forward(in_context_fc7, in_answers, params):
    """Pure-JAX reference of the torch forward, applying the same bf16 roundings
    the kernel applies to its MXU operands (weights are stored bf16)."""
    bsz, ctx_len, _ = in_context_fc7.shape
    hp = jax.lax.Precision.HIGHEST
    f32 = jnp.float32
    bf16_round = lambda a: a.astype(jnp.bfloat16).astype(f32)

    x = bf16_round(in_context_fc7.reshape(-1, D_FC7))
    w = params["w_lin"].astype(f32)
    lin = jax.nn.relu(jnp.dot(x, w, precision=hp) + params["b_lin"])
    lstm_in = lin.reshape(ctx_len, bsz, H)          # torch .view(L, B, H) reinterpretation
    w_ih = params["w_ih"].astype(f32)
    w_hh = params["w_hh"].astype(f32)
    h = jnp.zeros((bsz, H), f32)
    c = jnp.zeros((bsz, H), f32)
    outs = []
    for t in range(ctx_len):
        g = (jnp.dot(bf16_round(lstm_in[t]), w_ih, precision=hp)
             + jnp.dot(bf16_round(h), w_hh, precision=hp) + params["b_lstm"])
        i_g = jax.nn.sigmoid(g[:, :H])
        f_g = jax.nn.sigmoid(g[:, H:2 * H])
        g_g = jnp.tanh(g[:, 2 * H:3 * H])
        o_g = jax.nn.sigmoid(g[:, 3 * H:])
        c = f_g * c + i_g * g_g
        h = o_g * jnp.tanh(c)
        outs.append(h)
    ctx_rep = bf16_round(outs[2])                   # context_fc7_rep_all[2,:,:]
    emb = params["emb_hv"].astype(f32).T            # (VOCAB, H)
    ans_emb = emb[in_answers.reshape(-1, T)]        # (B*L, T, H)
    ans_rep = ans_emb.sum(axis=1).reshape(bsz, ctx_len, H)
    scores = jnp.sum(ctx_rep[:, None, :] * ans_rep, axis=-1)
    return jax.nn.softmax(scores, axis=1)


if __name__ == "__main__":
    key = jax.random.PRNGKey(0)
    k_in, k_ans, k_par = jax.random.split(key, 3)

    in_context_fc7 = jax.random.normal(k_in, (B, L, D_FC7), jnp.float32)
    in_answers = jax.random.randint(k_ans, (B, L, T), 0, VOCAB, dtype=jnp.int32)
    in_a_mask = (in_answers > 0).astype(jnp.float32)   # interface fidelity; unused (as in torch)
    params = init_params(k_par)

    preds = image_only_network_forward(in_context_fc7, in_answers, in_a_mask, params)
    preds = jax.block_until_ready(preds)

    ref = reference_forward(in_context_fc7, in_answers, params)
    assert preds.shape == (B, L)
    assert np.allclose(np.asarray(preds).sum(axis=1), 1.0, atol=1e-4)
    assert np.allclose(np.asarray(preds), np.asarray(ref), atol=5e-3), "mismatch vs pure-JAX reference"

    print("KERNEL_OK")
</pallas_src>

<mosaic_0001>
module attributes {stable_mosaic.version = 11 : i64} {
  func.func @fused_kernel(%arg0: i32, %arg1: memref<6x2048xf32, #tpu.memory_space<vmem>>, %arg2: memref<2048x128xbf16, #tpu.memory_space<vmem>>, %arg3: memref<1x128xf32, #tpu.memory_space<vmem>>, %arg4: memref<128x512xbf16, #tpu.memory_space<vmem>>, %arg5: memref<128x512xbf16, #tpu.memory_space<vmem>>, %arg6: memref<1x512xf32, #tpu.memory_space<vmem>>, %arg7: memref<128x128xbf16, #tpu.memory_space<vmem>>, %arg8: memref<6x30xi32, #tpu.memory_space<vmem>>, %arg9: memref<2x3xf32, #tpu.memory_space<vmem>>, %arg10: memref<6x128xf32, #tpu.memory_space<vmem>>, %arg11: memref<6x128xf32, #tpu.memory_space<vmem>>) attributes {dimension_semantics = [#tpu.dimension_semantics<arbitrary>], iteration_bounds = array<i64: 2>, scalar_prefetch = 0 : i64, scratch_operands = 2 : i64, tpu.core_type = #tpu.core_type<tc>, window_params = [{transform_indices = @transform_0, window_bounds = array<i64: 6, 2048>}, {transform_indices = @transform_1, window_bounds = array<i64: 2048, 128>}, {pipeline_mode = #tpu.pipeline_mode<synchronous>, transform_indices = @transform_2, window_bounds = array<i64: 1, 128>}, {pipeline_mode = #tpu.pipeline_mode<synchronous>, transform_indices = @transform_3, window_bounds = array<i64: 128, 512>}, {pipeline_mode = #tpu.pipeline_mode<synchronous>, transform_indices = @transform_4, window_bounds = array<i64: 128, 512>}, {pipeline_mode = #tpu.pipeline_mode<synchronous>, transform_indices = @transform_5, window_bounds = array<i64: 1, 512>}, {pipeline_mode = #tpu.pipeline_mode<synchronous>, transform_indices = @transform_6, window_bounds = array<i64: 128, 128>}, {pipeline_mode = #tpu.pipeline_mode<synchronous>, transform_indices = @transform_7, window_bounds = array<i64: 6, 30>}, {pipeline_mode = #tpu.pipeline_mode<synchronous>, transform_indices = @transform_8, window_bounds = array<i64: 2, 3>}]} {
    %c0_i32 = arith.constant 0 : i32
    %0 = arith.cmpi eq, %arg0, %c0_i32 : i32
    %1 = arith.extui %0 : i1 to i32
    %c0_i32_0 = arith.constant 0 : i32
    %2 = arith.cmpi ne, %1, %c0_i32_0 : i32
    scf.if %2 {
      %cst_9 = arith.constant 0.000000e+00 : f32
      %13 = vector.broadcast %cst_9 : f32 to vector<6x128xf32>
      %c0_10 = arith.constant 0 : index
      %c0_11 = arith.constant 0 : index
      %14 = vector.load %arg10[%c0_10, %c0_11] : memref<6x128xf32, #tpu.memory_space<vmem>>, vector<6x128xf32>
      tpu.vector_store %arg10[%c0_10, %c0_11], %13 {strides = array<i32>} : memref<6x128xf32, #tpu.memory_space<vmem>>, vector<6x128xf32>,
      %c0_12 = arith.constant 0 : index
      %c0_13 = arith.constant 0 : index
      %15 = vector.load %arg8[%c0_12, %c0_13] : memref<6x30xi32, #tpu.memory_space<vmem>>, vector<6x30xi32>
      %16 = tpu.iota {dimensions = array<i32: 2>} : vector<6x30x128xi32>
      %17 = vector.shape_cast %15 : vector<6x30xi32> to vector<6x30x1xi32>
      %18 = vector.broadcast %17 : vector<6x30x1xi32> to vector<6x30x128xi32>
      %19 = arith.cmpi eq, %18, %16 : vector<6x30x128xi32>
      %20 = arith.extui %19 : vector<6x30x128xi1> to vector<6x30x128xi32>
      %21 = arith.sitofp %20 : vector<6x30x128xi32> to vector<6x30x128xf32>
      %cst_14 = arith.constant dense<0.000000e+00> : vector<6x128xf32>
      %22 = vector.multi_reduction <add>, %21, %cst_14 [1] : vector<6x30x128xf32> to vector<6x128xf32>
      %c0_15 = arith.constant 0 : index
      %c0_16 = arith.constant 0 : index
      %23 = vector.load %arg11[%c0_15, %c0_16] : memref<6x128xf32, #tpu.memory_space<vmem>>, vector<6x128xf32>
      tpu.vector_store %arg11[%c0_15, %c0_16], %22 {strides = array<i32>} : memref<6x128xf32, #tpu.memory_space<vmem>>, vector<6x128xf32>,
    } else {
    }
    %c0 = arith.constant 0 : index
    %c0_1 = arith.constant 0 : index
    %3 = vector.load %arg10[%c0, %c0_1] : memref<6x128xf32, #tpu.memory_space<vmem>>, vector<6x128xf32>
    %c0_2 = arith.constant 0 : index
    %c0_3 = arith.constant 0 : index
    %4 = vector.load %arg1[%c0_2, %c0_3] : memref<6x2048xf32, #tpu.memory_space<vmem>>, vector<6x2048xf32>
    %5 = arith.truncf %4 : vector<6x2048xf32> to vector<6x2048xbf16>
    %c0_4 = arith.constant 0 : index
    %c0_5 = arith.constant 0 : index
    %6 = vector.load %arg2[%c0_4, %c0_5] : memref<2048x128xbf16, #tpu.memory_space<vmem>>, vector<2048x128xbf16>
    %cst = arith.constant dense<0.000000e+00> : vector<6x128xf32>
    %7 = tpu.matmul %5, %6, %cst {dimension_numbers = #tpu.dot_dimension_numbers<[1], [0], [0], [1], [0, 0, 1, 1], [], []>} : vector<6x2048xbf16>, vector<2048x128xbf16>, vector<6x128xf32> -> vector<6x128xf32>
    %8 = arith.addf %3, %7 : vector<6x128xf32>
    %c0_6 = arith.constant 0 : index
    %c0_7 = arith.constant 0 : index
    %9 = vector.load %arg10[%c0_6, %c0_7] : memref<6x128xf32, #tpu.memory_space<vmem>>, vector<6x128xf32>
    tpu.vector_store %arg10[%c0_6, %c0_7], %8 {strides = array<i32>} : memref<6x128xf32, #tpu.memory_space<vmem>>, vector<6x128xf32>,
    %c1_i32 = arith.constant 1 : i32
    %10 = arith.cmpi eq, %arg0, %c1_i32 : i32
    %11 = arith.extui %10 : i1 to i32
    %c0_i32_8 = arith.constant 0 : i32
    %12 = arith.cmpi ne, %11, %c0_i32_8 : i32
    scf.if %12 {
      %c0_9 = arith.constant 0 : index
      %c0_10 = arith.constant 0 : index
      %13 = vector.load %arg10[%c0_9, %c0_10] : memref<6x128xf32, #tpu.memory_space<vmem>>, vector<6x128xf32>
      %c0_11 = arith.constant 0 : index
      %c0_12 = arith.constant 0 : index
      %14 = vector.load %arg3[%c0_11, %c0_12] : memref<1x128xf32, #tpu.memory_space<vmem>>, vector<1x128xf32>
      %15 = vector.broadcast %14 : vector<1x128xf32> to vector<6x128xf32>
      %16 = arith.addf %13, %15 : vector<6x128xf32>
      %cst_13 = arith.constant 0.000000e+00 : f32
      %17 = vector.broadcast %cst_13 : f32 to vector<6x128xf32>
      %18 = arith.maximumf %16, %17 : vector<6x128xf32>
      %19 = arith.truncf %18 : vector<6x128xf32> to vector<6x128xbf16>
      %c0_14 = arith.constant 0 : index
      %c0_15 = arith.constant 0 : index
      %20 = vector.load %arg4[%c0_14, %c0_15] : memref<128x512xbf16, #tpu.memory_space<vmem>>, vector<128x512xbf16>
      %cst_16 = arith.constant dense<0.000000e+00> : vector<6x512xf32>
      %21 = tpu.matmul %19, %20, %cst_16 {dimension_numbers = #tpu.dot_dimension_numbers<[1], [0], [0], [1], [0, 0, 1, 1], [], []>} : vector<6x128xbf16>, vector<128x512xbf16>, vector<6x512xf32> -> vector<6x512xf32>
      %c0_17 = arith.constant 0 : index
      %c0_18 = arith.constant 0 : index
      %22 = vector.load %arg6[%c0_17, %c0_18] : memref<1x512xf32, #tpu.memory_space<vmem>>, vector<1x512xf32>
      %23 = vector.broadcast %22 : vector<1x512xf32> to vector<6x512xf32>
      %24 = arith.addf %21, %23 : vector<6x512xf32>
      %cst_19 = arith.constant 0.000000e+00 : f32
      %25 = vector.broadcast %cst_19 : f32 to vector<2x128xf32>
      %cst_20 = arith.constant 0.000000e+00 : f32
      %26 = vector.broadcast %cst_20 : f32 to vector<2x128xf32>
      %27 = vector.extract_strided_slice %24 {offsets = [0, 0], sizes = [2, 512], strides = [1, 1]} : vector<6x512xf32> to vector<2x512xf32>
      %28 = arith.truncf %25 : vector<2x128xf32> to vector<2x128xbf16>
      %c0_21 = arith.constant 0 : index
      %c0_22 = arith.constant 0 : index
      %29 = vector.load %arg5[%c0_21, %c0_22] : memref<128x512xbf16, #tpu.memory_space<vmem>>, vector<128x512xbf16>
      %cst_23 = arith.constant dense<0.000000e+00> : vector<2x512xf32>
      %30 = tpu.matmul %28, %29, %cst_23 {dimension_numbers = #tpu.dot_dimension_numbers<[1], [0], [0], [1], [0, 0, 1, 1], [], []>} : vector<2x128xbf16>, vector<128x512xbf16>, vector<2x512xf32> -> vector<2x512xf32>
      %31 = arith.addf %27, %30 : vector<2x512xf32>
      %32 = vector.extract_strided_slice %31 {offsets = [0, 0], sizes = [2, 128], strides = [1, 1]} : vector<2x512xf32> to vector<2x128xf32>
      %33 = arith.negf %32 : vector<2x128xf32>
      %34 = math.exp %33 : vector<2x128xf32>
      %cst_24 = arith.constant 1.000000e+00 : f32
      %35 = vector.broadcast %cst_24 : f32 to vector<2x128xf32>
      %36 = arith.addf %35, %34 : vector<2x128xf32>
      %37 = arith.divf %35, %36 : vector<2x128xf32>
      %38 = vector.extract_strided_slice %31 {offsets = [0, 128], sizes = [2, 128], strides = [1, 1]} : vector<2x512xf32> to vector<2x128xf32>
      %39 = arith.negf %38 : vector<2x128xf32>
      %40 = math.exp %39 : vector<2x128xf32>
      %cst_25 = arith.constant 1.000000e+00 : f32
      %41 = vector.broadcast %cst_25 : f32 to vector<2x128xf32>
      %42 = arith.addf %41, %40 : vector<2x128xf32>
      %43 = arith.divf %41, %42 : vector<2x128xf32>
      %44 = vector.extract_strided_slice %31 {offsets = [0, 256], sizes = [2, 128], strides = [1, 1]} : vector<2x512xf32> to vector<2x128xf32>
      %45 = math.tanh %44 : vector<2x128xf32>
      %46 = vector.extract_strided_slice %31 {offsets = [0, 384], sizes = [2, 128], strides = [1, 1]} : vector<2x512xf32> to vector<2x128xf32>
      %47 = arith.negf %46 : vector<2x128xf32>
      %48 = math.exp %47 : vector<2x128xf32>
      %cst_26 = arith.constant 1.000000e+00 : f32
      %49 = vector.broadcast %cst_26 : f32 to vector<2x128xf32>
      %50 = arith.addf %49, %48 : vector<2x128xf32>
      %51 = arith.divf %49, %50 : vector<2x128xf32>
      %52 = arith.mulf %43, %26 : vector<2x128xf32>
      %53 = arith.mulf %37, %45 : vector<2x128xf32>
      %54 = arith.addf %52, %53 : vector<2x128xf32>
      %55 = math.tanh %54 : vector<2x128xf32>
      %56 = arith.mulf %51, %55 : vector<2x128xf32>
      %57 = vector.extract_strided_slice %24 {offsets = [2, 0], sizes = [2, 512], strides = [1, 1]} : vector<6x512xf32> to vector<2x512xf32>
      %58 = arith.truncf %56 : vector<2x128xf32> to vector<2x128xbf16>
      %c0_27 = arith.constant 0 : index
      %c0_28 = arith.constant 0 : index
      %59 = vector.load %arg5[%c0_27, %c0_28] : memref<128x512xbf16, #tpu.memory_space<vmem>>, vector<128x512xbf16>
      %cst_29 = arith.constant dense<0.000000e+00> : vector<2x512xf32>
      %60 = tpu.matmul %58, %59, %cst_29 {dimension_numbers = #tpu.dot_dimension_numbers<[1], [0], [0], [1], [0, 0, 1, 1], [], []>} : vector<2x128xbf16>, vector<128x512xbf16>, vector<2x512xf32> -> vector<2x512xf32>
      %61 = arith.addf %57, %60 : vector<2x512xf32>
      %62 = vector.extract_strided_slice %61 {offsets = [0, 0], sizes = [2, 128], strides = [1, 1]} : vector<2x512xf32> to vector<2x128xf32>
      %63 = arith.negf %62 : vector<2x128xf32>
      %64 = math.exp %63 : vector<2x128xf32>
      %cst_30 = arith.constant 1.000000e+00 : f32
      %65 = vector.broadcast %cst_30 : f32 to vector<2x128xf32>
      %66 = arith.addf %65, %64 : vector<2x128xf32>
      %67 = arith.divf %65, %66 : vector<2x128xf32>
      %68 = vector.extract_strided_slice %61 {offsets = [0, 128], sizes = [2, 128], strides = [1, 1]} : vector<2x512xf32> to vector<2x128xf32>
      %69 = arith.negf %68 : vector<2x128xf32>
      %70 = math.exp %69 : vector<2x128xf32>
      %cst_31 = arith.constant 1.000000e+00 : f32
      %71 = vector.broadcast %cst_31 : f32 to vector<2x128xf32>
      %72 = arith.addf %71, %70 : vector<2x128xf32>
      %73 = arith.divf %71, %72 : vector<2x128xf32>
      %74 = vector.extract_strided_slice %61 {offsets = [0, 256], sizes = [2, 128], strides = [1, 1]} : vector<2x512xf32> to vector<2x128xf32>
      %75 = math.tanh %74 : vector<2x128xf32>
      %76 = vector.extract_strided_slice %61 {offsets = [0, 384], sizes = [2, 128], strides = [1, 1]} : vector<2x512xf32> to vector<2x128xf32>
      %77 = arith.negf %76 : vector<2x128xf32>
      %78 = math.exp %77 : vector<2x128xf32>
      %cst_32 = arith.constant 1.000000e+00 : f32
      %79 = vector.broadcast %cst_32 : f32 to vector<2x128xf32>
      %80 = arith.addf %79, %78 : vector<2x128xf32>
      %81 = arith.divf %79, %80 : vector<2x128xf32>
      %82 = arith.mulf %73, %54 : vector<2x128xf32>
      %83 = arith.mulf %67, %75 : vector<2x128xf32>
      %84 = arith.addf %82, %83 : vector<2x128xf32>
      %85 = math.tanh %84 : vector<2x128xf32>
      %86 = arith.mulf %81, %85 : vector<2x128xf32>
      %87 = vector.extract_strided_slice %24 {offsets = [4, 0], sizes = [2, 512], strides = [1, 1]} : vector<6x512xf32> to vector<2x512xf32>
      %88 = arith.truncf %86 : vector<2x128xf32> to vector<2x128xbf16>
      %c0_33 = arith.constant 0 : index
      %c0_34 = arith.constant 0 : index
      %89 = vector.load %arg5[%c0_33, %c0_34] : memref<128x512xbf16, #tpu.memory_space<vmem>>, vector<128x512xbf16>
      %cst_35 = arith.constant dense<0.000000e+00> : vector<2x512xf32>
      %90 = tpu.matmul %88, %89, %cst_35 {dimension_numbers = #tpu.dot_dimension_numbers<[1], [0], [0], [1], [0, 0, 1, 1], [], []>} : vector<2x128xbf16>, vector<128x512xbf16>, vector<2x512xf32> -> vector<2x512xf32>
      %91 = arith.addf %87, %90 : vector<2x512xf32>
      %92 = vector.extract_strided_slice %91 {offsets = [0, 0], sizes = [2, 128], strides = [1, 1]} : vector<2x512xf32> to vector<2x128xf32>
      %93 = arith.negf %92 : vector<2x128xf32>
      %94 = math.exp %93 : vector<2x128xf32>
      %cst_36 = arith.constant 1.000000e+00 : f32
      %95 = vector.broadcast %cst_36 : f32 to vector<2x128xf32>
      %96 = arith.addf %95, %94 : vector<2x128xf32>
      %97 = arith.divf %95, %96 : vector<2x128xf32>
      %98 = vector.extract_strided_slice %91 {offsets = [0, 128], sizes = [2, 128], strides = [1, 1]} : vector<2x512xf32> to vector<2x128xf32>
      %99 = arith.negf %98 : vector<2x128xf32>
      %100 = math.exp %99 : vector<2x128xf32>
      %cst_37 = arith.constant 1.000000e+00 : f32
      %101 = vector.broadcast %cst_37 : f32 to vector<2x128xf32>
      %102 = arith.addf %101, %100 : vector<2x128xf32>
      %103 = arith.divf %101, %102 : vector<2x128xf32>
      %104 = vector.extract_strided_slice %91 {offsets = [0, 256], sizes = [2, 128], strides = [1, 1]} : vector<2x512xf32> to vector<2x128xf32>
      %105 = math.tanh %104 : vector<2x128xf32>
      %106 = vector.extract_strided_slice %91 {offsets = [0, 384], sizes = [2, 128], strides = [1, 1]} : vector<2x512xf32> to vector<2x128xf32>
      %107 = arith.negf %106 : vector<2x128xf32>
      %108 = math.exp %107 : vector<2x128xf32>
      %cst_38 = arith.constant 1.000000e+00 : f32
      %109 = vector.broadcast %cst_38 : f32 to vector<2x128xf32>
      %110 = arith.addf %109, %108 : vector<2x128xf32>
      %111 = arith.divf %109, %110 : vector<2x128xf32>
      %112 = arith.mulf %103, %84 : vector<2x128xf32>
      %113 = arith.mulf %97, %105 : vector<2x128xf32>
      %114 = arith.addf %112, %113 : vector<2x128xf32>
      %115 = math.tanh %114 : vector<2x128xf32>
      %116 = arith.mulf %111, %115 : vector<2x128xf32>
      %117 = arith.truncf %116 : vector<2x128xf32> to vector<2x128xbf16>
      %c0_39 = arith.constant 0 : index
      %c0_40 = arith.constant 0 : index
      %118 = vector.load %arg7[%c0_39, %c0_40] : memref<128x128xbf16, #tpu.memory_space<vmem>>, vector<128x128xbf16>
      %cst_41 = arith.constant dense<0.000000e+00> : vector<2x128xf32>
      %119 = tpu.matmul %117, %118, %cst_41 {dimension_numbers = #tpu.dot_dimension_numbers<[1], [0], [0], [1], [0, 0, 1, 1], [], []>} : vector<2x128xbf16>, vector<128x128xbf16>, vector<2x128xf32> -> vector<2x128xf32>
      %c0_42 = arith.constant 0 : index
      %c0_43 = arith.constant 0 : index
      %120 = vector.load %arg11[%c0_42, %c0_43] : memref<6x128xf32, #tpu.memory_space<vmem>>, vector<6x128xf32>
      %121 = vector.shape_cast %120 : vector<6x128xf32> to vector<2x3x128xf32>
      %122 = vector.shape_cast %119 : vector<2x128xf32> to vector<2x1x128xf32>
      %123 = vector.broadcast %122 : vector<2x1x128xf32> to vector<2x3x128xf32>
      %124 = arith.mulf %121, %123 : vector<2x3x128xf32>
      %cst_44 = arith.constant dense<0.000000e+00> : vector<2x3xf32>
      %125 = vector.multi_reduction <add>, %124, %cst_44 [2] : vector<2x3x128xf32> to vector<2x3xf32>
      %cst_45 = arith.constant dense<0xFF800000> : vector<2xf32>
      %126 = vector.multi_reduction <maximumf>, %125, %cst_45 [1] : vector<2x3xf32> to vector<2xf32>
      %127 = vector.shape_cast %126 : vector<2xf32> to vector<2x1xf32>
      %128 = vector.broadcast %127 : vector<2x1xf32> to vector<2x3xf32>
      %129 = arith.subf %125, %128 : vector<2x3xf32>
      %130 = math.exp %129 : vector<2x3xf32>
      %cst_46 = arith.constant dense<0.000000e+00> : vector<2xf32>
      %131 = vector.multi_reduction <add>, %130, %cst_46 [1] : vector<2x3xf32> to vector<2xf32>
      %132 = vector.shape_cast %131 : vector<2xf32> to vector<2x1xf32>
      %133 = vector.broadcast %132 : vector<2x1xf32> to vector<2x3xf32>
      %134 = arith.divf %130, %133 : vector<2x3xf32>
      %c0_47 = arith.constant 0 : index
      %c0_48 = arith.constant 0 : index
      %135 = vector.load %arg9[%c0_47, %c0_48] : memref<2x3xf32, #tpu.memory_space<vmem>>, vector<2x3xf32>
      tpu.vector_store %arg9[%c0_47, %c0_48], %134 {strides = array<i32>} : memref<2x3xf32, #tpu.memory_space<vmem>>, vector<2x3xf32>,
    } else {
    }
    return
  }
  func.func @transform_0(%arg0: i32) -> (i32, i32) {
    %c0_i32 = arith.constant 0 : i32
    %c0_i32_0 = arith.constant 0 : i32
    return %c0_i32, %arg0 : i32, i32
  }
  func.func @transform_1(%arg0: i32) -> (i32, i32) {
    %c0_i32 = arith.constant 0 : i32
    %c0_i32_0 = arith.constant 0 : i32
    return %arg0, %c0_i32 : i32, i32
  }
  func.func @transform_2(%arg0: i32) -> (i32, i32) {
    %c0_i32 = arith.constant 0 : i32
    %c0_i32_0 = arith.constant 0 : i32
    %c0_i32_1 = arith.constant 0 : i32
    return %c0_i32, %c0_i32_0 : i32, i32
  }
  func.func @transform_3(%arg0: i32) -> (i32, i32) {
    %c0_i32 = arith.constant 0 : i32
    %c0_i32_0 = arith.constant 0 : i32
    %c0_i32_1 = arith.constant 0 : i32
    return %c0_i32, %c0_i32_0 : i32, i32
  }
  func.func @transform_4(%arg0: i32) -> (i32, i32) {
    %c0_i32 = arith.constant 0 : i32
    %c0_i32_0 = arith.constant 0 : i32
    %c0_i32_1 = arith.constant 0 : i32
    return %c0_i32, %c0_i32_0 : i32, i32
  }
  func.func @transform_5(%arg0: i32) -> (i32, i32) {
    %c0_i32 = arith.constant 0 : i32
    %c0_i32_0 = arith.constant 0 : i32
    %c0_i32_1 = arith.constant 0 : i32
    return %c0_i32, %c0_i32_0 : i32, i32
  }
  func.func @transform_6(%arg0: i32) -> (i32, i32) {
    %c0_i32 = arith.constant 0 : i32
    %c0_i32_0 = arith.constant 0 : i32
    %c0_i32_1 = arith.constant 0 : i32
    return %c0_i32, %c0_i32_0 : i32, i32
  }
  func.func @transform_7(%arg0: i32) -> (i32, i32) {
    %c0_i32 = arith.constant 0 : i32
    %c0_i32_0 = arith.constant 0 : i32
    %c0_i32_1 = arith.constant 0 : i32
    return %c0_i32, %c0_i32_0 : i32, i32
  }
  func.func @transform_8(%arg0: i32) -> (i32, i32) {
    %c0_i32 = arith.constant 0 : i32
    %c0_i32_0 = arith.constant 0 : i32
    %c0_i32_1 = arith.constant 0 : i32
    return %c0_i32, %c0_i32_0 : i32, i32
  }
}

</mosaic_0001>

<bundles_post_ra>
// kernel: tpu_custom_call.1
= control target key start
LH: loop header
LB: loop body
LE: loop exit
PB: predicated region body
PF: predicated region fallthrough
CT: control target
= control target key end

     0   :  { %s5280_s0 = inlined_call_operand.hbm [shape: f32[6,4096], index: 0, kind: input, shape index: {}]   ;;  %s5281_s1 = inlined_call_operand.hbm [shape: bf16[4096,128], index: 1, kind: input, shape index: {}]   ;;  %s5282_s2 = inlined_call_operand.vmem [shape: f32[1,128], index: 2, kind: input, shape index: {}]   ;;  %s5283_s3 = inlined_call_operand.hbm [shape: bf16[128,512], index: 3, kind: input, shape index: {}]   ;;  %s5284_s4 = inlined_call_operand.hbm [shape: bf16[128,512], index: 4, kind: input, shape index: {}]   ;;  %s5285_s5 = inlined_call_operand.vmem [shape: f32[1,512], index: 5, kind: input, shape index: {}]   ;;  %s5286_s6 = inlined_call_operand.hbm [shape: bf16[128,128], index: 6, kind: input, shape index: {}]   ;;  %s5287_s7 = inlined_call_operand.vmem [shape: s32[6,30], index: 7, kind: input, shape index: {}]   ;;  %s5288_s8 = inlined_call_operand.hbm [shape: f32[2,3], index: 8, kind: output, shape index: {}]  }
   0x1   :  { %5294 = sst [smem:[#allocation19_spill]] %s5280_s0 }
   0x2   :  { %13 = vsyncpa [#allocation5], 0 }
   0x3   :  { %15 = vsyncpa [#allocation5 + $0x1], 0 }
   0x4   :  { %16 = vsyncpa [#allocation8], 0 }
   0x5   :  { %18 = vsyncpa [#allocation8 + $0x1], 0 }
   0x6   :  { %19 = vsyncpa [#allocation11], 0 }
   0x7   :  { %20 = vsyncpa [#allocation6], 0  ;;  %s4557_s27 = smov 0   ;;  %s4559_s28 = smov 0  }
   0x8   :  { %s4561_s29 = smov 0   ;;  %s4563_s30 = smov 0  }
   0x9 LB: > { %s4576_s9 = sadd.s32 4294967295, %s4495_s30   ;;  %p46_p0 = scmp.ne.s32.totalorder %s4487_s28, %s4483_s27  ;;  %s4495_s30 = sphi %s4563_s30, %s5313_s30   ;;  %s4491_s29 = sphi %s4561_s29, %s5312_s29   ;;  %s4487_s28 = sphi %s4559_s28, %s5311_s28   ;;  %s4483_s27 = sphi %s4557_s27, %s5310_s27  }
   0xa   : > { %p5289_p1 = scmp.eq.s32.totalorder %s4576_s9, 0  ;;  %p3429_p2 = scmp.ge.s32.totalorder %s4495_s30, 1 }
   0xb   : > { %p230_p3 = scmp.lt.s32.totalorder %s4495_s30, 3  ;;  %s4497_s12 = smov [#allocation9]  }
   0xc   : > { %p4585_p5 = por %p5289_p1, %p46_p0  ;;  %s245_s13 = sshll.u32 %s4497_s12, 4  ;;  %s4593_s13 = int_to_ptr.vmem [resolvable:$true] %s245_s13 }
   0xd   : > { %p4589_p6 = pnand %p3429_p2, %p230_p3  ;;  %s4498_s15 = smov [#allocation10]  }
   0xe   : > { %s5295_s10 = scalar_select %p4585_p5, 1, 0 }
   0xf   : > { %s5296_s11 = scalar_select %p4589_p6, 1, 0 }
  0x10   : > { %p3913_p7 = pneg %p4589_p6  ;;  %s258_s16 = sshll.u32 %s4498_s15, 4  ;;  %s4603_s16 = int_to_ptr.vmem [resolvable:$true] %s258_s16 }
  0x11   : > { %s4499_s17 = smov [#allocation12]   ;;  %s4275_s21 = scalar_lea.hbm %s5283_s3, 4096 }
  0x12   : > { %p4599_p8 = pnand %p3913_p7, %p5289_p1  ;;  %s4605_s18 = sshll.u32 %s4499_s17, 4  ;;  %s275_s18 = int_to_ptr.vmem [resolvable:$true] %s4605_s18 }
  0x13   : > { %p4276_p9 = scmp.ne.s32.totalorder %s5283_s3, %s4275_s21  ;;  %p4282_p13 = scmp.lt.u32.totalorder %s4275_s21, %s5283_s3 }
  0x14   : > { %p4615_p10 = pneg %p4599_p8 }
  0x16   : > { %p4278_p11 = pnand %p4615_p10, %p4276_p9 }
  0x18   : > { %p4279_p12 = pneg %p4278_p11 }
  0x1a   : > { %p4284_p0 = pnand %p4282_p13, %p4279_p12 }
  0x1c   : > { %4287 = shalt.err (!%p4284_p0)
}
  0x1d   : > { %s4288_s27 = scalar_lea.vmem %s4593_s13, 4096  ;;  %p4296_p4 = scmp.lt.s32.totalorder %s4593_s13, %s4593_s13 }
  0x1e   : > { %p4289_p2 = scmp.ne.s32.totalorder %s4593_s13, %s4288_s27  ;;  %p4297_p1 = scmp.lt.s32.totalorder %s4288_s27, %s4288_s27 }
  0x20   : > { %p4291_p3 = pnand %p4289_p2, %p4615_p10  ;;  %p4298_p9 = por %p4297_p1, %p4296_p4 }
  0x22   : > { %p4292_p7 = pneg %p4291_p3 }
  0x24   : > { %p4299_p11 = pnand %p4298_p9, %p4292_p7 }
  0x26   : > { %4302 = shalt.err (!%p4299_p11)
}
  0x27   : > { %s4500_s12 = smov 256   ;;  %s4501_s15 = smov 16  }
  0x28   : > { %3916 = dma.hbm_to_vmem [thread:$0]  (!%p4599_p8), %s5283_s3, 4096, %s4593_s13, [#allocation8], %s4500_s12, %s4500_s12, %s4501_s15  }
  0x29   : > { %s4303_s22 = scalar_lea.hbm %s5284_s4, 4096 }
  0x2a   : > { %p4304_p1 = scmp.ne.s32.totalorder %s5284_s4, %s4303_s22  ;;  %p4310_p13 = scmp.lt.u32.totalorder %s4303_s22, %s5284_s4 }
  0x2c   : > { %p4306_p4 = pnand %p4304_p1, %p4615_p10 }
  0x2e   : > { %p4307_p12 = pneg %p4306_p4 }
  0x30   : > { %p4312_p0 = pnand %p4310_p13, %p4307_p12 }
  0x32   : > { %4315 = shalt.err (!%p4312_p0)
}
  0x33   : > { %s4316_s13 = scalar_lea.vmem %s4603_s16, 4096  ;;  %p4324_p9 = scmp.lt.s32.totalorder %s4603_s16, %s4603_s16 }
  0x34   : > { %p4317_p2 = scmp.ne.s32.totalorder %s4603_s16, %s4316_s13  ;;  %p4325_p11 = scmp.lt.s32.totalorder %s4316_s13, %s4316_s13 }
  0x36   : > { %p4319_p3 = pnand %p4317_p2, %p4615_p10  ;;  %p4326_p1 = por %p4325_p11, %p4324_p9 }
  0x38   : > { %p4320_p7 = pneg %p4319_p3 }
  0x3a   : > { %p4327_p4 = pnand %p4326_p1, %p4320_p7 }
  0x3c   : > { %4330 = shalt.err (!%p4327_p4)
}
  0x3d   : > { %3919 = dma.hbm_to_vmem [thread:$0]  (!%p4599_p8), %s5284_s4, 4096, %s4603_s16, [#allocation11], %s4500_s12, %s4500_s12, %s4501_s15  }
  0x3e   : > { %s4331_s22 = scalar_lea.hbm %s5286_s6, 1024 }
  0x3f   : > { %p4332_p12 = scmp.ne.s32.totalorder %s5286_s6, %s4331_s22  ;;  %p4338_p2 = scmp.lt.u32.totalorder %s4331_s22, %s5286_s6 }
  0x41   : > { %p4334_p13 = pnand %p4332_p12, %p4615_p10 }
  0x43   : > { %p4335_p0 = pneg %p4334_p13 }
  0x45   : > { %p4340_p3 = pnand %p4338_p2, %p4335_p0 }
  0x47   : > { %4343 = shalt.err (!%p4340_p3)
}
  0x48   : > { %s4344_s13 = scalar_lea.vmem %s275_s18, 1024  ;;  %p4352_p1 = scmp.lt.s32.totalorder %s275_s18, %s275_s18 }
  0x49   : > { %p4345_p7 = scmp.ne.s32.totalorder %s275_s18, %s4344_s13  ;;  %p4353_p4 = scmp.lt.s32.totalorder %s4344_s13, %s4344_s13 }
  0x4b   : > { %p4347_p9 = pnand %p4345_p7, %p4615_p10  ;;  %p4354_p5 = por %p4353_p4, %p4352_p1 }
  0x4d   : > { %p4348_p11 = pneg %p4347_p9 }
  0x4f   : > { %p4355_p6 = pnand %p4354_p5, %p4348_p11 }
  0x51   : > { %4358 = shalt.err (!%p4355_p6)
}
  0x52   : > { %s5292_s16 = smov 64   ;;  %s5293_s24 = smov 4  }
  0x53   : > { %3922 = dma.hbm_to_vmem [thread:$0]  (!%p4599_p8), %s5286_s6, 1024, %s275_s18, [#allocation11], %s5292_s16, %s5292_s16, %s5293_s24  }
  0x54   : > { %s4682_s17 = sadd.s32 1, %s4495_s30   ;;  %s33_s20 = sadd.s32 1, %s4491_s29 }
  0x55   : > { %s30_s19 = ssub.s32 %s4495_s30, %s4682_s17  ;;  %p40_p6 = scmp.ne.s32.totalorder %s4491_s29, %s4487_s28 }
  0x56   : > { %p31_p5 = scmp.eq.s32.totalorder %s30_s19, 0  ;;  %p41_p10 = scmp.eq.s32.totalorder %s4495_s30, 0 }
  0x57   : > { %p3933_p12 = scmp.lt.s32.totalorder %s4495_s30, 2  ;;  %s4695_s14 = sand.u32 1, %s4491_s29  }
  0x58   : > { %s4692_s21 = scalar_select %p31_p5, %s4491_s29, %s33_s20  }
  0x59   : > { %p42_p13 = por %p41_p10, %p40_p6  ;;  %s3434_s22 = sshll.u32 %s4695_s14, 7 }
  0x5a   : > { %s3686_s18 = sshll.u32 %s4495_s30, 11  ;;  %s5299_s0 = sld [smem:[#allocation19_spill]] }
  0x5b   : > { %s295_s27 = scalar_lea.vmem [#allocation4], %s3434_s22  ;;  %p4706_p8 = pnand %p3933_p12, %p42_p13 }
  0x5c   : > { %s303_s13 = sshll.u32 %s295_s27, 4  ;;  %s3437_s15 = sshll.u32 %s4695_s14, 10  ;;  %s4704_s13 = int_to_ptr.vmem [resolvable:$true] %s303_s13 }
  0x5d   : > { %s310_s19 = sand.u32 1, %s4495_s30   ;;  %s292_s20 = scalar_lea.sflag [#allocation5], %s4695_s14 }
  0x5e   : > { %p4361_p2 = pneg %p4706_p8 }
  0x60   : > { %s4702_s26 = scalar_lea.hbm %s5299_s0, %s3686_s18  ;;  %s4364_s25 = scalar_lea.hbm %s5299_s0, 4096 }
  0x61   : > { %s4359_s23 = scalar_lea.hbm %s4702_s26, 2048  ;;  %p4365_p9 = scmp.lt.u32.totalorder %s4702_s26, %s5299_s0 }
  0x62   : > { %p4360_p0 = scmp.ne.s32.totalorder %s4702_s26, %s4359_s23  ;;  %p4366_p11 = scmp.lt.u32.totalorder %s4364_s25, %s4359_s23 }
  0x63   : > { %p4368_p4 = scmp.lt.u32.totalorder %s4359_s23, %s4702_s26 }
  0x64   : > { %p4362_p3 = pnand %p4361_p2, %p4360_p0  ;;  %p4367_p1 = por %p4366_p11, %p4365_p9 }
  0x66   : > { %p4363_p7 = pneg %p4362_p3  ;;  %p4369_p5 = por %p4368_p4, %p4367_p1 }
  0x68   : > { %p4370_p6 = pnand %p4369_p5, %p4363_p7 }
  0x6a   : > { %4373 = shalt.err (!%p4370_p6)
}
  0x6b   : > { %s4374_s24 = scalar_lea.vmem %s4704_s13, 2048  ;;  %s4504_s22 = smov [#allocation4]  }
  0x6c   : > { %p4375_p10 = scmp.ne.s32.totalorder %s4704_s13, %s4374_s24  ;;  %s4379_s18 = sshll.u32 %s4504_s22, 4  ;;  %s4380_s18 = int_to_ptr.vmem [resolvable:$false] %s4379_s18 }
  0x6d   : > { %s4381_s16 = scalar_lea.vmem %s4380_s18, 4096  ;;  %p4382_p0 = scmp.lt.s32.totalorder %s4704_s13, %s4380_s18 }
  0x6e   : > { %p4377_p12 = pnand %p4375_p10, %p4361_p2  ;;  %p4383_p3 = scmp.lt.s32.totalorder %s4381_s16, %s4374_s24 }
  0x70   : > { %p4378_p13 = pneg %p4377_p12  ;;  %p4384_p9 = por %p4383_p3, %p4382_p0 }
  0x72   : > { %p4385_p11 = pnand %p4384_p9, %p4378_p13 }
  0x74   : > { %4388 = shalt.err (!%p4385_p11)
}
  0x75   : > { %3926 = dma.hbm_to_vmem [thread:$0]  (!%p4706_p8), %s4702_s26, 2048, %s4704_s13, %s292_s20  }
  0x76   : > { %s314_s23 = scalar_lea.vmem [#allocation7], %s3437_s15  ;;  %s3687_s27 = sshll.u32 %s4495_s30, 14 }
  0x77   : > { %s321_s25 = sshll.u32 %s314_s23, 4  ;;  %s4746_s18 = scalar_lea.hbm %s5281_s1, %s3687_s27  ;;  %s4740_s25 = int_to_ptr.vmem [resolvable:$true] %s321_s25 }
  0x78   : > { %s4750_s16 = scalar_lea.sflag [#allocation8], %s310_s19  ;;  %s4389_s0 = scalar_lea.hbm %s4746_s18, 16384 }
  0x79   : > { %p4390_p7 = scmp.ne.s32.totalorder %s4746_s18, %s4389_s0  ;;  %s4394_s13 = scalar_lea.hbm %s5281_s1, 32768 }
  0x7a   : > { %p4395_p5 = scmp.lt.u32.totalorder %s4746_s18, %s5281_s1  ;;  %p4396_p6 = scmp.lt.u32.totalorder %s4394_s13, %s4389_s0 }
  0x7b   : > { %p4392_p1 = pnand %p4390_p7, %p4361_p2  ;;  %p4398_p12 = scmp.lt.u32.totalorder %s4389_s0, %s4746_s18 }
  0x7c   : > { %p4397_p10 = por %p4396_p6, %p4395_p5 }
  0x7d   : > { %p4393_p4 = pneg %p4392_p1 }
  0x7e   : > { %p4399_p13 = por %p4398_p12, %p4397_p10 }
  0x80   : > { %p4400_p0 = pnand %p4399_p13, %p4393_p4 }
  0x82   : > { %4403 = shalt.err (!%p4400_p0)
}
  0x83   : > { %s4404_s30 = scalar_lea.vmem %s4740_s25, 16384  ;;  %s4505_s19 = smov [#allocation7]  }
  0x84   : > { %p4405_p3 = scmp.ne.s32.totalorder %s4740_s25, %s4404_s30  ;;  %s4409_s23 = sshll.u32 %s4505_s19, 4  ;;  %s4410_s23 = int_to_ptr.vmem [resolvable:$false] %s4409_s23 }
  0x85   : > { %s4411_s27 = scalar_lea.vmem %s4410_s23, 32768  ;;  %p4412_p7 = scmp.lt.s32.totalorder %s4740_s25, %s4410_s23 }
  0x86   : > { %p4407_p9 = pnand %p4405_p3, %p4361_p2  ;;  %p4413_p1 = scmp.lt.s32.totalorder %s4411_s27, %s4404_s30 }
  0x88   : > { %p4408_p11 = pneg %p4407_p9  ;;  %p4414_p5 = por %p4413_p1, %p4412_p7 }
  0x8a   : > { %p4415_p6 = pnand %p4414_p5, %p4408_p11 }
  0x8c   : > { %4418 = shalt.err (!%p4415_p6)
}
  0x8d   : > { %s5301_s0 = smov 4   ;;  %s5302_s22 = smov 64  }
  0x8e   : > { %3929 = dma.hbm_to_vmem [thread:$0]  (!%p4706_p8), %s4746_s18, 16384, %s4740_s25, %s4750_s16, %s5302_s22, %s5302_s22, %s5301_s0  }
  0x8f   : > { %p5303_p2 = scmp.ne.s32.totalorder %s5296_s11, 0 }
  0x90   : > { %s335_s24 = sand.u32 (!%p5303_p2), 1, %s4487_s28   ;;  %p5304_p4 = scmp.ne.s32.totalorder (!%p5303_p2), %s5295_s10, 0 }
  0x91   : > { %333 = sbr.rel (%p5303_p2) target bundleno = 2530 (0x9e2), region = 52  ;;  %s3441_s14 = sshll.u32 (!%p5303_p2), %s335_s24, 7 }
  0x92   : > { %s336_s26 = scalar_lea.sflag (!%p5303_p2), [#allocation5], %s335_s24  ;;  %s4782_s13 = scalar_lea.vmem (!%p5303_p2), [#allocation4], %s3441_s14 }
  0x98   : > { %4462 = dma.done.wait (%p5304_p4), %s336_s26, 2048  }
  0x99   : > { %4464 = vsyncadd (%p5304_p4), %s336_s26, 4294965248  ;;  %s344_s12 = sand.u32 1, %s4576_s9   ;;  %s3442_s15 = sshll.u32 %s335_s24, 10 }
  0x9a   : > { %s345_s25 = scalar_lea.sflag [#allocation8], %s344_s12  ;;  %s4789_s18 = scalar_lea.vmem [#allocation7], %s3442_s15 }
  0x9b   : > { %4466 = dma.done.wait (%p5304_p4), %s345_s25, 16384  }
  0x9c   : > { %4468 = vsyncadd (%p5304_p4), %s345_s25, 4294950912  ;;  %p5305_p8 = scmp.eq.s32.totalorder %s4576_s9, 0 }
  0x9e   : > { %4470 = dma.done.wait (%p5305_p8), [#allocation8], 4096   ;;  %p5306_p10 = pmov %p5305_p8 }
  0x9f   : > { %p5307_p12 = pmov %p5305_p8 }
  0xa0   : > { %4472 = vsyncadd (%p5306_p10), [#allocation8], 4294963200 }
  0xa1   : > { %4474 = dma.done.wait (%p5307_p12), [#allocation11], 5120   ;;  %p5308_p13 = pmov %p5305_p8 }
  0xa2   : > { %p5309_p0 = scmp.ne.s32.totalorder %s4576_s9, 0 }
  0xa3   : > { %4476 = vsyncadd (%p5308_p13), [#allocation11], 4294962176  ;;  %v402_v0 = vlaneseq (!%p5309_p0)  ;;  %v4506_v1 = vmov (!%p5309_p0), 0.0   ;;  %v401_v3 = vld [vmem:[%s5287_s7] sm:$0x3f] (!%p5309_p0)  ;;  %vm592_vm7 = vcmask (!%p5309_p0), 1045504  }
  0xa4   : > { %399 = sbr.rel (%p5309_p0) target bundleno = 350 (0x15e), region = 76  ;;  %400 = vst [vmem:[#allocation2] sm:$0x3f] (!%p5309_p0), %v4506_v1 }
  0xa5   : > { %v405_v2 = vshrl.u32 (!%p5309_p0), %v402_v0, 7  ;;  %v4809_v24 = vand.u32 (!%p5309_p0), 127, %v402_v0 }
  0xa7   : > { %v425_v4 = vsub.s32 (!%p5309_p0), 1, %v405_v2  ;;  %v406_v5 = vsub.s32 (!%p5309_p0), 0, %v405_v2  ;;  %v444_v8 = vsub.s32 (!%p5309_p0), 2, %v405_v2  ;;  %v463_v10 = vsub.s32 (!%p5309_p0), 3, %v405_v2 }
  0xa8   : > { %v482_v12 = vsub.s32 (!%p5309_p0), 4, %v405_v2  ;;  %v501_v14 = vsub.s32 (!%p5309_p0), 5, %v405_v2 }
  0xa9   : > { %v426_v6 = vrot.slane (!%p5309_p0), %v401_v3, %v425_v4  ;;  %v407_v7 = vrot.slane (!%p5309_p0), %v401_v3, %v406_v5  ;;  %v445_v9 = vrot.slane (!%p5309_p0), %v401_v3, %v444_v8  ;;  %v464_v11 = vrot.slane (!%p5309_p0), %v401_v3, %v463_v10 }
  0xaa   : > { %v483_v13 = vrot.slane (!%p5309_p0), %v401_v3, %v482_v12  ;;  %v502_v15 = vrot.slane (!%p5309_p0), %v401_v3, %v501_v14 }
  0xab   : > { %428 = vbcast.lane.b32.xlu1 %v426_v6, 256  ;;  %409 = vbcast.lane.b32.xlu0 %v407_v7, 256 }
  0xaf   : > { %432 = vbcast.lane.b32.xlu1 %v426_v6, 264  ;;  %413 = vbcast.lane.b32.xlu0 %v407_v7, 264 }
  0xb3   : > { %451 = vbcast.lane.b32.xlu1 %v445_v9, 264  ;;  %447 = vbcast.lane.b32.xlu0 %v445_v9, 256 }
  0xb7   : > { %436 = vbcast.lane.b32.xlu1 %v426_v6, 272  ;;  %417 = vbcast.lane.b32.xlu0 %v407_v7, 272 }
  0xbb   : > { %470 = vbcast.lane.b32.xlu1 %v464_v11, 264  ;;  %466 = vbcast.lane.b32.xlu0 %v464_v11, 256 }
  0xbf   : > { %440 = vbcast.lane.b32.xlu1 %v426_v6, 280  ;;  %421 = vbcast.lane.b32.xlu0 %v407_v7, 280 }
  0xc3   : > { %485 = vbcast.lane.b32.xlu1 %v483_v13, 256  ;;  %455 = vbcast.lane.b32.xlu0 %v445_v9, 272 }
  0xc7   : > { %459 = vbcast.lane.b32.xlu1 %v445_v9, 280  ;;  %489 = vbcast.lane.b32.xlu0 %v483_v13, 264 }
  0xcb   : > { %504 = vbcast.lane.b32.xlu1 %v502_v15, 256  ;;  %474 = vbcast.lane.b32.xlu0 %v464_v11, 272 }
  0xcf   : > { %478 = vbcast.lane.b32.xlu1 %v464_v11, 280  ;;  %508 = vbcast.lane.b32.xlu0 %v502_v15, 264 }
  0xd3   : > { %493 = vbcast.lane.b32.xlu0 %v483_v13, 272  ;;  %497 = vbcast.lane.b32.xlu1 %v483_v13, 280 }
  0xd7   : > { %512 = vbcast.lane.b32.xlu0 %v502_v15, 272  ;;  %516 = vbcast.lane.b32.xlu1 %v502_v15, 280 }
 0x11d   : > { %v429_v16 = vpop.permute.xlu1 %428  ;;  %v410_v17 = vpop.permute.xlu0 %409 }
 0x11e   : > { %vm522_vm1 = vcmp.eq.s32.totalorder %v429_v16, %v4809_v24  ;;  %vm518_vm9 = vcmp.eq.s32.totalorder %v410_v17, %v4809_v24 }
 0x11f   : > { %v3451_v31 = vsel %vm522_vm1, 1.0, %v4506_v1  ;;  %v3447_v41 = vsel %vm518_vm9, 1.0, %v4506_v1 }
 0x121   : > { %v433_v18 = vpop.permute.xlu1 %432  ;;  %v414_v19 = vpop.permute.xlu0 %413 }
 0x122   : > { %vm523_vm0 = vcmp.eq.s32.totalorder %v433_v18, %v4809_v24  ;;  %vm519_vm3 = vcmp.eq.s32.totalorder %v414_v19, %v4809_v24 }
 0x123   : > { %v3452_v29 = vsel %vm523_vm0, 1.0, %v4506_v1  ;;  %v3448_v34 = vsel %vm519_vm3, 1.0, %v4506_v1 }
 0x124   : > { %v601_v33 = vadd.f32 %v3452_v29, %v3451_v31  ;;  %v590_v44 = vadd.f32 %v3448_v34, %v3447_v41 }
 0x125   : > { %v452_v20 = vpop.permute.xlu1 %451  ;;  %v448_v21 = vpop.permute.xlu0 %447 }
 0x126   : > { %vm527_vm4 = vcmp.eq.s32.totalorder %v452_v20, %v4809_v24  ;;  %vm526_vm6 = vcmp.eq.s32.totalorder %v448_v21, %v4809_v24 }
 0x127   : > { %v3456_v35 = vsel %vm527_vm4, 1.0, %v4506_v1  ;;  %v3455_v38 = vsel %vm526_vm6, 1.0, %v4506_v1 }
 0x128   : > { %v611_v46 = vadd.f32 %v3456_v35, %v3455_v38 }
 0x129   : > { %v437_v22 = vpop.permute.xlu1 %436  ;;  %v418_v23 = vpop.permute.xlu0 %417 }
 0x12a   : > { %vm524_vm2 = vcmp.eq.s32.totalorder %v437_v22, %v4809_v24  ;;  %vm520_vm10 = vcmp.eq.s32.totalorder %v418_v23, %v4809_v24 }
 0x12b   : > { %v3453_v32 = vsel %vm524_vm2, 1.0, %v4506_v1  ;;  %v3449_v43 = vsel %vm520_vm10, 1.0, %v4506_v1  ;;  %vm657_vm10 = vcmask 1041409  }
 0x12c   : > { %v602_v42 = vadd.f32 %v3453_v32, %v601_v33  ;;  %v591_v51 = vadd.f32 %v3449_v43, %v590_v44 }
 0x12d   : > { %v471_v25 = vpop.permute.xlu1 %470  ;;  %v467_v26 = vpop.permute.xlu0 %466 }
 0x12e   : > { %vm531_vm13 = vcmp.eq.s32.totalorder %v471_v25, %v4809_v24  ;;  %vm530_vm14 = vcmp.eq.s32.totalorder %v467_v26, %v4809_v24 }
 0x12f   : > { %v3460_v60 = vsel %vm531_vm13, 1.0, %v4506_v1  ;;  %v3459_v61 = vsel %vm530_vm14, 1.0, %v4506_v1  ;;  %vm665_vm13 = vcmask 1045509  }
 0x130   : > { %v621_v0 = vadd.f32 %v3460_v60, %v3459_v61 }
 0x131   : > { %v441_v27 = vpop.permute.xlu1 %440  ;;  %v422_v28 = vpop.permute.xlu0 %421 }
 0x132   : > { %vm525_vm5 = vcmp.eq.s32.totalorder %v441_v27, %v4809_v24  ;;  %vm521_vm8 = vcmp.eq.s32.totalorder %v422_v28, %v4809_v24 }
 0x133   : > { %v3454_v30 = vsel %vm525_vm5, 1.0, %v4506_v1  ;;  %v3450_v40 = vsel %vm521_vm8, 1.0, %v4506_v1 }
 0x134   : > { %v603_v39 = vsel %vm592_vm7, %v3454_v30, 0.0  ;;  %v593_v48 = vsel %vm592_vm7, %v3450_v40, 0.0 }
 0x135   : > { %v486_v36 = vpop.permute.xlu1 %485  ;;  %v456_v37 = vpop.permute.xlu0 %455  ;;  %v604_v47 = vadd.f32 %v603_v39, %v602_v42  ;;  %v594_v54 = vadd.f32 %v593_v48, %v591_v51 }
 0x136   : > { %vm528_vm11 = vcmp.eq.s32.totalorder %v456_v37, %v4809_v24  ;;  %vm534_vm1 = vcmp.eq.s32.totalorder %v486_v36, %v4809_v24 }
 0x137   : > { %v3457_v45 = vsel %vm528_vm11, 1.0, %v4506_v1  ;;  %v605_v56 = vrot.slane %v604_v47, 4  ;;  %v595_v62 = vrot.slane %v594_v54, 4  ;;  %v3463_v12 = vsel %vm534_vm1, 1.0, %v4506_v1 }
 0x138   : > { %v612_v52 = vadd.f32 %v3457_v45, %v611_v46  ;;  %vm659_vm11 = vcmask 1042434  }
 0x139   : > { %v460_v49 = vpop.permute.xlu1 %459  ;;  %v490_v50 = vpop.permute.xlu0 %489  ;;  %v606_v2 = vadd.f32 %v605_v56, %v604_v47  ;;  %v596_v9 = vadd.f32 %v595_v62, %v594_v54 }
 0x13a   : > { %vm529_vm12 = vcmp.eq.s32.totalorder %v460_v49, %v4809_v24  ;;  %vm535_vm0 = vcmp.eq.s32.totalorder %v490_v50, %v4809_v24 }
 0x13b   : > { %v3458_v53 = vsel %vm529_vm12, 1.0, %v4506_v1  ;;  %v3464_v6 = vsel %vm535_vm0, 1.0, %v4506_v1  ;;  %v607_v11 = vrot.slane %v606_v2, 2  ;;  %v597_v22 = vrot.slane %v596_v9, 2 }
 0x13c   : > { %v613_v55 = vsel %vm592_vm7, %v3458_v53, 0.0  ;;  %v631_v17 = vadd.f32 %v3464_v6, %v3463_v12  ;;  %vm663_vm12 = vcmask 1044484  }
 0x13d   : > { %v614_v57 = vadd.f32 %v613_v55, %v612_v52  ;;  %v505_v58 = vpop.permute.xlu1 %504  ;;  %v475_v59 = vpop.permute.xlu0 %474  ;;  %v608_v33 = vadd.f32 %v607_v11, %v606_v2  ;;  %v598_v37 = vadd.f32 %v597_v22, %v596_v9 }
 0x13e   : > { %vm532_vm15 = vcmp.eq.s32.totalorder %v475_v59, %v4809_v24  ;;  %vm538_vm4 = vcmp.eq.s32.totalorder %v505_v58, %v4809_v24 }
 0x13f   : > { %v3461_v63 = vsel %vm532_vm15, 1.0, %v4506_v1  ;;  %v615_v3 = vrot.slane %v614_v57, 4  ;;  %v3467_v27 = vsel %vm538_vm4, 1.0, %v4506_v1  ;;  %v609_v45 = vrot.slane %v608_v33, 1 }
 0x140   : > { %v622_v7 = vadd.f32 %v3461_v63, %v621_v0  ;;  %v599_v46 = vrot.slane %v598_v37, 1 }
 0x141   : > { %v479_v4 = vpop.permute.xlu1 %478  ;;  %v509_v5 = vpop.permute.xlu0 %508  ;;  %v616_v13 = vadd.f32 %v615_v3, %v614_v57  ;;  %v610_v52 = vadd.f32 %v609_v45, %v608_v33 }
 0x142   : > { %vm533_vm2 = vcmp.eq.s32.totalorder %v479_v4, %v4809_v24  ;;  %vm539_vm3 = vcmp.eq.s32.totalorder %v509_v5, %v4809_v24  ;;  %v600_v53 = vadd.f32 %v599_v46, %v598_v37 }
 0x143   : > { %v3462_v8 = vsel %vm533_vm2, 1.0, %v4506_v1  ;;  %v3468_v19 = vsel %vm539_vm3, 1.0, %v4506_v1  ;;  %v617_v26 = vrot.slane %v616_v13, 2 }
 0x144   : > { %v623_v10 = vsel %vm592_vm7, %v3462_v8, 0.0  ;;  %v641_v31 = vadd.f32 %v3468_v19, %v3467_v27  ;;  %v658_v59 = vsel %vm657_vm10, %v610_v52, %v600_v53 }
 0x145   : > { %v624_v14 = vadd.f32 %v623_v10, %v622_v7  ;;  %v494_v15 = vpop.permute.xlu0 %493  ;;  %v498_v16 = vpop.permute.xlu1 %497  ;;  %v618_v41 = vadd.f32 %v617_v26, %v616_v13 }
 0x146   : > { %vm536_vm5 = vcmp.eq.s32.totalorder %v494_v15, %v4809_v24  ;;  %vm537_vm6 = vcmp.eq.s32.totalorder %v498_v16, %v4809_v24 }
 0x147   : > { %v625_v18 = vrot.slane %v624_v14, 4  ;;  %v3465_v20 = vsel %vm536_vm5, 1.0, %v4506_v1  ;;  %v3466_v21 = vsel %vm537_vm6, 1.0, %v4506_v1 }
 0x148   : > { %v632_v23 = vadd.f32 %v3465_v20, %v631_v17  ;;  %v633_v25 = vsel %vm592_vm7, %v3466_v21, 0.0 }
 0x149   : > { %v626_v28 = vadd.f32 %v625_v18, %v624_v14  ;;  %v513_v29 = vpop.permute.xlu0 %512  ;;  %v517_v30 = vpop.permute.xlu1 %516 }
 0x14a   : > { %v634_v32 = vadd.f32 %v633_v25, %v632_v23  ;;  %vm540_vm8 = vcmp.eq.s32.totalorder %v513_v29, %v4809_v24  ;;  %vm541_vm9 = vcmp.eq.s32.totalorder %v517_v30, %v4809_v24  ;;  %v619_v24 = vrot.slane %v618_v41, 1 }
 0x14b   : > { %v627_v34 = vrot.slane %v626_v28, 2  ;;  %v3469_v35 = vsel %vm540_vm8, 1.0, %v4506_v1  ;;  %v3470_v36 = vsel %vm541_vm9, 1.0, %v4506_v1 }
 0x14c   : > { %v635_v38 = vrot.slane %v634_v32, 4  ;;  %v642_v39 = vadd.f32 %v3469_v35, %v641_v31  ;;  %v643_v40 = vsel %vm592_vm7, %v3470_v36, 0.0  ;;  %v620_v55 = vadd.f32 %v619_v24, %v618_v41 }
 0x14d   : > { %v628_v42 = vadd.f32 %v627_v34, %v626_v28  ;;  %vm661_vm7 = vcmask 1043459  }
 0x14e   : > { %v636_v43 = vadd.f32 %v635_v38, %v634_v32  ;;  %v644_v44 = vadd.f32 %v643_v40, %v642_v39  ;;  %v660_v61 = vsel %vm659_vm11, %v620_v55, %v658_v59 }
 0x14f   : > { %v629_v49 = vrot.slane %v628_v42, 1 }
 0x150   : > { %v637_v47 = vrot.slane %v636_v43, 2  ;;  %v645_v48 = vrot.slane %v644_v44, 4 }
 0x151   : > { %v630_v56 = vadd.f32 %v629_v49, %v628_v42 }
 0x152   : > { %v638_v50 = vadd.f32 %v637_v47, %v636_v43  ;;  %v646_v51 = vadd.f32 %v645_v48, %v644_v44 }
 0x153   : > { %v662_v62 = vsel %vm661_vm7, %v630_v56, %v660_v61 }
 0x154   : > { %v639_v1 = vrot.slane %v638_v50, 1  ;;  %v647_v54 = vrot.slane %v646_v51, 2 }
 0x156   : > { %v648_v57 = vadd.f32 %v647_v54, %v646_v51  ;;  %v640_v58 = vadd.f32 %v639_v1, %v638_v50 }
 0x158   : > { %v649_v60 = vrot.slane %v648_v57, 1  ;;  %v664_v0 = vsel %vm663_vm12, %v640_v58, %v662_v62 }
 0x15a   : > { %v650_v63 = vadd.f32 %v649_v60, %v648_v57 }
 0x15c   : > { %v666_v2 = vsel %vm665_vm13, %v650_v63, %v664_v0 }
 0x15d   : > { %668 = vst [vmem:[#allocation3] sm:$0x3f] %v666_v2 }
 0x15e PF: > { %v3984_v3 = vld [vmem:[%s4789_s18 + $0x40] sm:$0xff]   ;;  %v3988_v7 = vld [vmem:[%s4789_s18 + $0x48] sm:$0xff]   ;;  %v3992_v11 = vld [vmem:[%s4789_s18 + $0x50] sm:$0xff]   ;;  %p3599_p3 = scmp.ne.s32.totalorder %s4576_s9, 1 }
 0x15f   : > { %v3985_v4 = vld [vmem:[%s4789_s18 + $0xc0] sm:$0xff]   ;;  %3688 = vmatprep.subr.bf16.mxu0 %v3984_v3  ;;  %v3989_v8 = vld [vmem:[%s4789_s18 + $0xc8] sm:$0xff]   ;;  %v3993_v12 = vld [vmem:[%s4789_s18 + $0xd0] sm:$0xff]   ;;  %vm4509_vm14 = vmmov (!%p3599_p3), 0   ;;  %vm3222_vm15 = vcmask (!%p3599_p3), 1042432   ;;  %vm3241_vm0 = vcmask (!%p3599_p3), 1041409  }
 0x160   : > { %v3986_v5 = vld [vmem:[%s4789_s18] sm:$0xff]   ;;  %3710 = vmatprep.subr.bf16.mxu1 %v3985_v4  ;;  %v3990_v9 = vld [vmem:[%s4789_s18 + $0x8] sm:$0xff]   ;;  %v3994_v13 = vld [vmem:[%s4789_s18 + $0x10] sm:$0xff]   ;;  %vm3244_vm1 = vcmask (!%p3599_p3), 17408  }
 0x161   : > { %v3987_v6 = vld [vmem:[%s4789_s18 + $0x80] sm:$0xff]   ;;  %3689 = vmatpush3.bf16.msra.mxu0 %v3986_v5  ;;  %v3991_v10 = vld [vmem:[%s4789_s18 + $0x88] sm:$0xff]   ;;  %v3995_v14 = vld [vmem:[%s4789_s18 + $0x90] sm:$0xff]  }
 0x162   : > { %3711 = vmatpush3.bf16.msra.mxu1 %v3987_v6  ;;  %3690 = vmatprep.subr.bf16.mxu0 %v3988_v7  ;;  %v3996_v15 = vld [vmem:[%s4789_s18 + $0x58] sm:$0xff]   ;;  %v4000_v19 = vld [vmem:[%s4789_s18 + $0x60] sm:$0xff]   ;;  %v4004_v23 = vld [vmem:[%s4789_s18 + $0x68] sm:$0xff]  }
 0x163   : > { %3712 = vmatprep.subr.bf16.mxu1 %v3989_v8  ;;  %v3997_v16 = vld [vmem:[%s4789_s18 + $0xd8] sm:$0xff]   ;;  %v4001_v20 = vld [vmem:[%s4789_s18 + $0xe0] sm:$0xff]   ;;  %v4005_v25 = vld [vmem:[%s4789_s18 + $0xe8] sm:$0xff]  }
 0x164   : > { %v3998_v17 = vld [vmem:[%s4789_s18 + $0x18] sm:$0xff]   ;;  %v4002_v21 = vld [vmem:[%s4789_s18 + $0x20] sm:$0xff]   ;;  %v4006_v26 = vld [vmem:[%s4789_s18 + $0x28] sm:$0xff]  }
 0x165   : > { %3691 = vmatpush3.bf16.msra.mxu0 %v3990_v9  ;;  %v3999_v18 = vld [vmem:[%s4789_s18 + $0x98] sm:$0xff]   ;;  %v4003_v22 = vld [vmem:[%s4789_s18 + $0xa0] sm:$0xff]   ;;  %v4007_v27 = vld [vmem:[%s4789_s18 + $0xa8] sm:$0xff]  }
 0x166   : > { %3713 = vmatpush3.bf16.msra.mxu1 %v3991_v10  ;;  %3692 = vmatprep.subr.bf16.mxu0 %v3992_v11  ;;  %v4008_v28 = vld [vmem:[%s4789_s18 + $0x70] sm:$0xff]   ;;  %v4012_v32 = vld [vmem:[%s4789_s18 + $0x78] sm:$0xff]   ;;  %v671_v36 = vld [vmem:[%s4782_s13 + $0x8] sm:$0x3f] }
 0x167   : > { %3714 = vmatprep.subr.bf16.mxu1 %v3993_v12  ;;  %v4009_v29 = vld [vmem:[%s4789_s18 + $0xf0] sm:$0xff]   ;;  %v4013_v33 = vld [vmem:[%s4789_s18 + $0xf8] sm:$0xff]   ;;  %v670_v38 = vld [vmem:[%s4782_s13] sm:$0x3f]  ;;  %v687_v39 = vpack.c.bf16 %v671_v36, %v671_v36 }
 0x168   : > { %v4010_v30 = vld [vmem:[%s4789_s18 + $0x30] sm:$0xff]   ;;  %v4014_v34 = vld [vmem:[%s4789_s18 + $0x38] sm:$0xff]   ;;  %v686_v41 = vpack.c.bf16 %v670_v38, %v670_v38  ;;  %v4016_v44 = vld [vmem:[%s4789_s18 + $0x140] sm:$0xff]  }
 0x169   : > { %3693 = vmatpush3.bf16.msra.mxu0 %v3994_v13  ;;  %v4011_v31 = vld [vmem:[%s4789_s18 + $0xb0] sm:$0xff]   ;;  %v4015_v35 = vld [vmem:[%s4789_s18 + $0xb8] sm:$0xff]   ;;  %1758 = vmatprep.mubr.bf16.mxu0 %v687_v39  ;;  %v4017_v45 = vld [vmem:[%s4789_s18 + $0x1c0] sm:$0xff]  }
 0x16a   : > { %3715 = vmatpush3.bf16.msra.mxu1 %v3995_v14  ;;  %3694 = vmatprep.subr.bf16.mxu0 %v3996_v15  ;;  %v673_v37 = vld [vmem:[%s4782_s13 + $0x18] sm:$0x3f]  ;;  %v672_v42 = vld [vmem:[%s4782_s13 + $0x10] sm:$0x3f]  ;;  %v4018_v46 = vld [vmem:[%s4789_s18 + $0x100] sm:$0xff]  }
 0x16b   : > { %3716 = vmatprep.subr.bf16.mxu1 %v3997_v16  ;;  %v689_v40 = vpack.c.bf16 %v673_v37, %v673_v37  ;;  %v688_v43 = vpack.c.bf16 %v672_v42, %v672_v42  ;;  %v4019_v47 = vld [vmem:[%s4789_s18 + $0x180] sm:$0xff]   ;;  %v4020_v48 = vld [vmem:[%s4789_s18 + $0x148] sm:$0xff]   ;;  %v4024_v51 = vld [vmem:[%s4789_s18 + $0x150] sm:$0xff]  }
 0x16c   : > { %v4021_v24 = vld [vmem:[%s4789_s18 + $0x1c8] sm:$0xff]   ;;  %v4025_v52 = vld [vmem:[%s4789_s18 + $0x1d0] sm:$0xff]   ;;  %v4028_v54 = vld [vmem:[%s4789_s18 + $0x158] sm:$0xff]  }
 0x16d   : > { %3695 = vmatpush3.bf16.msra.mxu0 %v3998_v17  ;;  %1798 = vmatprep.mubr.bf16.mxu1 %v689_v40  ;;  %v4022_v49 = vld [vmem:[%s4789_s18 + $0x108] sm:$0xff]   ;;  %v4026_v53 = vld [vmem:[%s4789_s18 + $0x110] sm:$0xff]   ;;  %v4029_v55 = vld [vmem:[%s4789_s18 + $0x1d8] sm:$0xff]  }
 0x16e   : > { %3717 = vmatpush3.bf16.msra.mxu1 %v3999_v18  ;;  %3696 = vmatprep.subr.bf16.mxu0 %v4000_v19  ;;  %v4023_v50 = vld [vmem:[%s4789_s18 + $0x188] sm:$0xff]   ;;  %v4027_v1 = vld [vmem:[%s4789_s18 + $0x190] sm:$0xff]   ;;  %v4030_v56 = vld [vmem:[%s4789_s18 + $0x118] sm:$0xff]  }
 0x16f   : > { %3718 = vmatprep.subr.bf16.mxu1 %v4001_v20  ;;  %v4031_v57 = vld [vmem:[%s4789_s18 + $0x198] sm:$0xff]   ;;  %v4032_v58 = vld [vmem:[%s4789_s18 + $0x160] sm:$0xff]   ;;  %v4036_v62 = vld [vmem:[%s4789_s18 + $0x168] sm:$0xff]  }
 0x170   : > { %v4033_v59 = vld [vmem:[%s4789_s18 + $0x1e0] sm:$0xff]   ;;  %v4037_v63 = vld [vmem:[%s4789_s18 + $0x1e8] sm:$0xff]   ;;  %v4040_v3 = vld [vmem:[%s4789_s18 + $0x170] sm:$0xff]  }
 0x171   : > { %3697 = vmatpush3.bf16.msra.mxu0 %v4002_v21  ;;  %v4034_v60 = vld [vmem:[%s4789_s18 + $0x120] sm:$0xff]   ;;  %v4038_v0 = vld [vmem:[%s4789_s18 + $0x128] sm:$0xff]   ;;  %v4041_v4 = vld [vmem:[%s4789_s18 + $0x1f0] sm:$0xff]  }
 0x172   : > { %3719 = vmatpush3.bf16.msra.mxu1 %v4003_v22  ;;  %3698 = vmatprep.subr.bf16.mxu0 %v4004_v23  ;;  %v4035_v61 = vld [vmem:[%s4789_s18 + $0x1a0] sm:$0xff]   ;;  %v4039_v2 = vld [vmem:[%s4789_s18 + $0x1a8] sm:$0xff]   ;;  %v4042_v5 = vld [vmem:[%s4789_s18 + $0x130] sm:$0xff]  }
 0x173   : > { %3720 = vmatprep.subr.bf16.mxu1 %v4005_v25  ;;  %v4043_v6 = vld [vmem:[%s4789_s18 + $0x1b0] sm:$0xff]   ;;  %v4044_v7 = vld [vmem:[%s4789_s18 + $0x178] sm:$0xff]   ;;  %v675_v11 = vld [vmem:[%s4782_s13 + $0x28] sm:$0x3f] }
 0x174   : > { %v4045_v8 = vld [vmem:[%s4789_s18 + $0x1f8] sm:$0xff]   ;;  %v691_v13 = vpack.c.bf16 %v675_v11, %v675_v11  ;;  %v674_v15 = vld [vmem:[%s4782_s13 + $0x20] sm:$0x3f]  ;;  %v676_v16 = vld [vmem:[%s4782_s13 + $0x30] sm:$0x3f] }
 0x175   : > { %3699 = vmatpush3.bf16.msra.mxu0 %v4006_v26  ;;  %v4046_v9 = vld [vmem:[%s4789_s18 + $0x138] sm:$0xff]   ;;  %v690_v17 = vpack.c.bf16 %v674_v15, %v674_v15  ;;  %v692_v18 = vpack.c.bf16 %v676_v16, %v676_v16  ;;  %v4048_v19 = vld [vmem:[%s4789_s18 + $0x240] sm:$0xff]   ;;  %v4052_v23 = vld [vmem:[%s4789_s18 + $0x248] sm:$0xff]  }
 0x176   : > { %3721 = vmatpush3.bf16.msra.mxu1 %v4007_v27  ;;  %3700 = vmatprep.subr.bf16.mxu0 %v4008_v28  ;;  %v4047_v10 = vld [vmem:[%s4789_s18 + $0x1b8] sm:$0xff]   ;;  %v4049_v20 = vld [vmem:[%s4789_s18 + $0x2c0] sm:$0xff]   ;;  %v4053_v25 = vld [vmem:[%s4789_s18 + $0x2c8] sm:$0xff]  }
 0x177   : > { %3722 = vmatprep.subr.bf16.mxu1 %v4009_v29  ;;  %v677_v12 = vld [vmem:[%s4782_s13 + $0x38] sm:$0x3f]  ;;  %v4050_v21 = vld [vmem:[%s4789_s18 + $0x200] sm:$0xff]   ;;  %v4054_v26 = vld [vmem:[%s4789_s18 + $0x208] sm:$0xff]  }
 0x178   : > { %v693_v14 = vpack.c.bf16 %v677_v12, %v677_v12  ;;  %v4051_v22 = vld [vmem:[%s4789_s18 + $0x280] sm:$0xff]   ;;  %v4055_v27 = vld [vmem:[%s4789_s18 + $0x288] sm:$0xff]   ;;  %v4056_v28 = vld [vmem:[%s4789_s18 + $0x250] sm:$0xff]  }
 0x179   : > { %3701 = vmatpush3.bf16.msra.mxu0 %v4010_v30  ;;  %v4057_v29 = vld [vmem:[%s4789_s18 + $0x2d0] sm:$0xff]   ;;  %v4064_v36 = vld [vmem:[%s4789_s18 + $0x260] sm:$0xff]   ;;  %v4068_v40 = vld [vmem:[%s4789_s18 + $0x268] sm:$0xff]  }
 0x17a   : > { %3723 = vmatpush3.bf16.msra.mxu1 %v4011_v31  ;;  %3702 = vmatprep.subr.bf16.mxu0 %v4012_v32  ;;  %v4058_v30 = vld [vmem:[%s4789_s18 + $0x210] sm:$0xff]   ;;  %v4060_v32 = vld [vmem:[%s4789_s18 + $0x258] sm:$0xff]   ;;  %v4065_v37 = vld [vmem:[%s4789_s18 + $0x2e0] sm:$0xff]  }
 0x17b   : > { %3724 = vmatprep.subr.bf16.mxu1 %v4013_v33  ;;  %v4059_v31 = vld [vmem:[%s4789_s18 + $0x290] sm:$0xff]   ;;  %v4061_v33 = vld [vmem:[%s4789_s18 + $0x2d8] sm:$0xff]   ;;  %v4066_v38 = vld [vmem:[%s4789_s18 + $0x220] sm:$0xff]  }
 0x17c   : > { %v4067_v39 = vld [vmem:[%s4789_s18 + $0x2a0] sm:$0xff]   ;;  %v4070_v42 = vld [vmem:[%s4789_s18 + $0x228] sm:$0xff]  }
 0x17d   : > { %3703 = vmatpush3.bf16.msra.mxu0 %v4014_v34  ;;  %v4062_v34 = vld [vmem:[%s4789_s18 + $0x218] sm:$0xff]   ;;  %v4096_v11 = vld [vmem:[%s4789_s18 + $0x360] sm:$0xff]   ;;  %v4100_v15 = vld [vmem:[%s4789_s18 + $0x368] sm:$0xff]  }
 0x17e   : > { %3725 = vmatpush3.bf16.msra.mxu1 %v4015_v35  ;;  %3732 = vmatprep.subr.bf16.mxu0 %v4016_v44  ;;  %v4063_v35 = vld [vmem:[%s4789_s18 + $0x298] sm:$0xff]   ;;  %v4072_v44 = vld [vmem:[%s4789_s18 + $0x270] sm:$0xff]   ;;  %v4097_v12 = vld [vmem:[%s4789_s18 + $0x3e0] sm:$0xff]  }
 0x17f   : > { %3754 = vmatprep.subr.bf16.mxu1 %v4017_v45  ;;  %v4073_v45 = vld [vmem:[%s4789_s18 + $0x2f0] sm:$0xff]   ;;  %v4101_v16 = vld [vmem:[%s4789_s18 + $0x3e8] sm:$0xff]  }
 0x180   : > { %1759 = vmatmul.mubr.bf16.vlgmr.msra.gmra.mrb[0].mxu0 %v686_v41  ;;  %v4069_v41 = vld [vmem:[%s4789_s18 + $0x2e8] sm:$0xff]  }
 0x181   : > { %1799 = vmatmul.mubr.bf16.vlgmr.msra.gmra.mrb[0].mxu1 %v688_v43  ;;  %3733 = vmatpush3.bf16.msra.mxu0 %v4018_v46  ;;  %v4071_v43 = vld [vmem:[%s4789_s18 + $0x2a8] sm:$0xff]   ;;  %v4074_v46 = vld [vmem:[%s4789_s18 + $0x230] sm:$0xff]  }
 0x182   : > { %3755 = vmatpush3.bf16.msra.mxu1 %v4019_v47  ;;  %3734 = vmatprep.subr.bf16.mxu0 %v4020_v48  ;;  %v4075_v47 = vld [vmem:[%s4789_s18 + $0x2b0] sm:$0xff]   ;;  %v4076_v48 = vld [vmem:[%s4789_s18 + $0x278] sm:$0xff]  }
 0x183   : > { %3756 = vmatprep.subr.bf16.mxu1 %v4021_v24  ;;  %1838 = vmatprep.mubr.bf16.mxu0 %v691_v13  ;;  %v4077_v24 = vld [vmem:[%s4789_s18 + $0x2f8] sm:$0xff]   ;;  %v4098_v13 = vld [vmem:[%s4789_s18 + $0x320] sm:$0xff]  }
 0x184   : > { %1878 = vmatprep.mubr.bf16.mxu1 %v693_v14  ;;  %v4099_v14 = vld [vmem:[%s4789_s18 + $0x3a0] sm:$0xff]  }
 0x185   : > { %3735 = vmatpush3.bf16.msra.mxu0 %v4022_v49  ;;  %v4078_v49 = vld [vmem:[%s4789_s18 + $0x238] sm:$0xff]  }
 0x186   : > { %3757 = vmatpush3.bf16.msra.mxu1 %v4023_v50  ;;  %3736 = vmatprep.subr.bf16.mxu0 %v4024_v51  ;;  %v4079_v50 = vld [vmem:[%s4789_s18 + $0x2b8] sm:$0xff]   ;;  %v679_v51 = vld [vmem:[%s4782_s13 + $0x48] sm:$0x3f] }
 0x187   : > { %3758 = vmatprep.subr.bf16.mxu1 %v4025_v52  ;;  %v695_v52 = vpack.c.bf16 %v679_v51, %v679_v51 }
 0x189   : > { %3737 = vmatpush3.bf16.msra.mxu0 %v4026_v53  ;;  %v681_v53 = vld [vmem:[%s4782_s13 + $0x58] sm:$0x3f] }
 0x18a   : > { %3759 = vmatpush3.bf16.msra.mxu1 %v4027_v1  ;;  %3738 = vmatprep.subr.bf16.mxu0 %v4028_v54  ;;  %v678_v1 = vld [vmem:[%s4782_s13 + $0x40] sm:$0x3f]  ;;  %v680_v54 = vld [vmem:[%s4782_s13 + $0x50] sm:$0x3f] }
 0x18b   : > { %3760 = vmatprep.subr.bf16.mxu1 %v4029_v55  ;;  %v697_v55 = vpack.c.bf16 %v681_v53, %v681_v53 }
 0x18d   : > { %3739 = vmatpush3.bf16.msra.mxu0 %v4030_v56  ;;  %v694_v56 = vpack.c.bf16 %v678_v1, %v678_v1 }
 0x18e   : > { %3761 = vmatpush3.bf16.msra.mxu1 %v4031_v57  ;;  %3740 = vmatprep.subr.bf16.mxu0 %v4032_v58  ;;  %v696_v57 = vpack.c.bf16 %v680_v54, %v680_v54  ;;  %v4080_v58 = vld [vmem:[%s4789_s18 + $0x340] sm:$0xff]  }
 0x18f   : > { %3762 = vmatprep.subr.bf16.mxu1 %v4033_v59  ;;  %v4081_v59 = vld [vmem:[%s4789_s18 + $0x3c0] sm:$0xff]  }
 0x191   : > { %3741 = vmatpush3.bf16.msra.mxu0 %v4034_v60  ;;  %v4082_v60 = vld [vmem:[%s4789_s18 + $0x300] sm:$0xff]  }
 0x192   : > { %3763 = vmatpush3.bf16.msra.mxu1 %v4035_v61  ;;  %3742 = vmatprep.subr.bf16.mxu0 %v4036_v62  ;;  %v4083_v61 = vld [vmem:[%s4789_s18 + $0x380] sm:$0xff]   ;;  %v4084_v62 = vld [vmem:[%s4789_s18 + $0x348] sm:$0xff]  }
 0x193   : > { %3764 = vmatprep.subr.bf16.mxu1 %v4037_v63  ;;  %v4085_v63 = vld [vmem:[%s4789_s18 + $0x3c8] sm:$0xff]  }
 0x195   : > { %3743 = vmatpush3.bf16.msra.mxu0 %v4038_v0  ;;  %v4086_v0 = vld [vmem:[%s4789_s18 + $0x308] sm:$0xff]  }
 0x196   : > { %3765 = vmatpush3.bf16.msra.mxu1 %v4039_v2  ;;  %3744 = vmatprep.subr.bf16.mxu0 %v4040_v3  ;;  %v4087_v2 = vld [vmem:[%s4789_s18 + $0x388] sm:$0xff]   ;;  %v4088_v3 = vld [vmem:[%s4789_s18 + $0x350] sm:$0xff]  }
 0x197   : > { %3766 = vmatprep.subr.bf16.mxu1 %v4041_v4  ;;  %v4089_v4 = vld [vmem:[%s4789_s18 + $0x3d0] sm:$0xff]  }
 0x199   : > { %3745 = vmatpush3.bf16.msra.mxu0 %v4042_v5  ;;  %v4090_v5 = vld [vmem:[%s4789_s18 + $0x310] sm:$0xff]  }
 0x19a   : > { %3767 = vmatpush3.bf16.msra.mxu1 %v4043_v6  ;;  %3746 = vmatprep.subr.bf16.mxu0 %v4044_v7  ;;  %v4091_v6 = vld [vmem:[%s4789_s18 + $0x390] sm:$0xff]   ;;  %v4092_v7 = vld [vmem:[%s4789_s18 + $0x358] sm:$0xff]  }
 0x19b   : > { %3768 = vmatprep.subr.bf16.mxu1 %v4045_v8  ;;  %v4093_v8 = vld [vmem:[%s4789_s18 + $0x3d8] sm:$0xff]  }
 0x19d   : > { %3747 = vmatpush3.bf16.msra.mxu0 %v4046_v9  ;;  %v4094_v9 = vld [vmem:[%s4789_s18 + $0x318] sm:$0xff]  }
 0x19e   : > { %3769 = vmatpush3.bf16.msra.mxu1 %v4047_v10  ;;  %3776 = vmatprep.subr.bf16.mxu0 %v4048_v19  ;;  %v4095_v10 = vld [vmem:[%s4789_s18 + $0x398] sm:$0xff]   ;;  %v4104_v19 = vld [vmem:[%s4789_s18 + $0x370] sm:$0xff]  }
 0x19f   : > { %3798 = vmatprep.subr.bf16.mxu1 %v4049_v20  ;;  %v4105_v20 = vld [vmem:[%s4789_s18 + $0x3f0] sm:$0xff]  }
 0x1a0   : > { %1839 = vmatmul.mubr.bf16.vlgmr.msra.gmra.mrb[4].mxu0 %v690_v17  ;;  %v4102_v17 = vld [vmem:[%s4789_s18 + $0x328] sm:$0xff]  }
 0x1a1   : > { %1879 = vmatmul.mubr.bf16.vlgmr.msra.gmra.mrb[4].mxu1 %v692_v18  ;;  %3777 = vmatpush3.bf16.msra.mxu0 %v4050_v21  ;;  %v4103_v18 = vld [vmem:[%s4789_s18 + $0x3a8] sm:$0xff]   ;;  %v4106_v21 = vld [vmem:[%s4789_s18 + $0x330] sm:$0xff]  }
 0x1a2   : > { %3799 = vmatpush3.bf16.msra.mxu1 %v4051_v22  ;;  %3778 = vmatprep.subr.bf16.mxu0 %v4052_v23  ;;  %v4107_v22 = vld [vmem:[%s4789_s18 + $0x3b0] sm:$0xff]   ;;  %v4108_v23 = vld [vmem:[%s4789_s18 + $0x378] sm:$0xff]  }
 0x1a3   : > { %3800 = vmatprep.subr.bf16.mxu1 %v4053_v25  ;;  %1918 = vmatprep.mubr.bf16.mxu0 %v695_v52  ;;  %v4109_v25 = vld [vmem:[%s4789_s18 + $0x3f8] sm:$0xff]  }
 0x1a4   : > { %1958 = vmatprep.mubr.bf16.mxu1 %v697_v55 }
 0x1a5   : > { %3779 = vmatpush3.bf16.msra.mxu0 %v4054_v26  ;;  %v4110_v26 = vld [vmem:[%s4789_s18 + $0x338] sm:$0xff]  }
 0x1a6   : > { %3801 = vmatpush3.bf16.msra.mxu1 %v4055_v27  ;;  %3780 = vmatprep.subr.bf16.mxu0 %v4056_v28  ;;  %v4111_v27 = vld [vmem:[%s4789_s18 + $0x3b8] sm:$0xff]   ;;  %v683_v28 = vld [vmem:[%s4782_s13 + $0x68] sm:$0x3f] }
 0x1a7   : > { %3802 = vmatprep.subr.bf16.mxu1 %v4057_v29  ;;  %v685_v29 = vld [vmem:[%s4782_s13 + $0x78] sm:$0x3f] }
 0x1a9   : > { %3781 = vmatpush3.bf16.msra.mxu0 %v4058_v30  ;;  %v682_v30 = vld [vmem:[%s4782_s13 + $0x60] sm:$0x3f] }
 0x1aa   : > { %3803 = vmatpush3.bf16.msra.mxu1 %v4059_v31  ;;  %3782 = vmatprep.subr.bf16.mxu0 %v4060_v32  ;;  %v699_v31 = vpack.c.bf16 %v683_v28, %v683_v28  ;;  %v701_v32 = vpack.c.bf16 %v685_v29, %v685_v29  ;;  %v4124_v28 = vld [vmem:[#allocation9 + $0x20] ss:$16 sps:$4 sm:$0xff] (!%p3599_p3)   ;;  %v4125_v29 = vld [vmem:[#allocation9 + $0x28] ss:$16 sps:$4 sm:$0xff] (!%p3599_p3)  }
 0x1ab   : > { %3804 = vmatprep.subr.bf16.mxu1 %v4061_v33  ;;  %v698_v33 = vpack.c.bf16 %v682_v30, %v682_v30  ;;  %v4126_v30 = vld [vmem:[#allocation9 + $0x44] ss:$16 sps:$4 sm:$0xff] (!%p3599_p3)  }
 0x1ad   : > { %3783 = vmatpush3.bf16.msra.mxu0 %v4062_v34  ;;  %v684_v34 = vld [vmem:[%s4782_s13 + $0x70] sm:$0x3f] }
 0x1ae   : > { %3805 = vmatpush3.bf16.msra.mxu1 %v4063_v35  ;;  %3784 = vmatprep.subr.bf16.mxu0 %v4064_v36  ;;  %v700_v35 = vpack.c.bf16 %v684_v34, %v684_v34  ;;  %v4132_v34 = vld [vmem:[#allocation9 + $0x64] ss:$16 sps:$4 sm:$0xff] (!%p3599_p3)  }
 0x1af   : > { %3806 = vmatprep.subr.bf16.mxu1 %v4065_v37 }
 0x1b1   : > { %3785 = vmatpush3.bf16.msra.mxu0 %v4066_v38 }
 0x1b2   : > { %3807 = vmatpush3.bf16.msra.mxu1 %v4067_v39  ;;  %3786 = vmatprep.subr.bf16.mxu0 %v4068_v40 }
 0x1b3   : > { %3808 = vmatprep.subr.bf16.mxu1 %v4069_v41 }
 0x1b5   : > { %3787 = vmatpush3.bf16.msra.mxu0 %v4070_v42 }
 0x1b6   : > { %3809 = vmatpush3.bf16.msra.mxu1 %v4071_v43  ;;  %3788 = vmatprep.subr.bf16.mxu0 %v4072_v44 }
 0x1b7   : > { %3810 = vmatprep.subr.bf16.mxu1 %v4073_v45 }
 0x1b9   : > { %3789 = vmatpush3.bf16.msra.mxu0 %v4074_v46 }
 0x1ba   : > { %3811 = vmatpush3.bf16.msra.mxu1 %v4075_v47  ;;  %3790 = vmatprep.subr.bf16.mxu0 %v4076_v48 }
 0x1bb   : > { %3812 = vmatprep.subr.bf16.mxu1 %v4077_v24 }
 0x1bd   : > { %3791 = vmatpush3.bf16.msra.mxu0 %v4078_v49 }
 0x1be   : > { %3813 = vmatpush3.bf16.msra.mxu1 %v4079_v50  ;;  %3820 = vmatprep.subr.bf16.mxu0 %v4080_v58 }
 0x1bf   : > { %3842 = vmatprep.subr.bf16.mxu1 %v4081_v59 }
 0x1c0   : > { %1919 = vmatmul.mubr.bf16.vlgmr.msra.gmra.mrb[8].mxu0 %v694_v56 }
 0x1c1   : > { %1959 = vmatmul.mubr.bf16.vlgmr.msra.gmra.mrb[8].mxu1 %v696_v57  ;;  %3821 = vmatpush3.bf16.msra.mxu0 %v4082_v60 }
 0x1c2   : > { %3843 = vmatpush3.bf16.msra.mxu1 %v4083_v61  ;;  %3822 = vmatprep.subr.bf16.mxu0 %v4084_v62 }
 0x1c3   : > { %3844 = vmatprep.subr.bf16.mxu1 %v4085_v63  ;;  %1998 = vmatprep.mubr.bf16.mxu0 %v699_v31  ;;  %v4128_v31 = vld [vmem:[#allocation9 + $0x4c] ss:$16 sps:$4 sm:$0xff] (!%p3599_p3)  }
 0x1c4   : > { %2038 = vmatprep.mubr.bf16.mxu1 %v701_v32  ;;  %v4130_v32 = vld [vmem:[#allocation9 + $0x40] ss:$16 sps:$4 sm:$0xff] (!%p3599_p3)  }
 0x1c5   : > { %3823 = vmatpush3.bf16.msra.mxu0 %v4086_v0 }
 0x1c6   : > { %3845 = vmatpush3.bf16.msra.mxu1 %v4087_v2  ;;  %3824 = vmatprep.subr.bf16.mxu0 %v4088_v3 }
 0x1c7   : > { %3846 = vmatprep.subr.bf16.mxu1 %v4089_v4 }
 0x1c9   : > { %3825 = vmatpush3.bf16.msra.mxu0 %v4090_v5 }
 0x1ca   : > { %3847 = vmatpush3.bf16.msra.mxu1 %v4091_v6  ;;  %3826 = vmatprep.subr.bf16.mxu0 %v4092_v7 }
 0x1cb   : > { %3848 = vmatprep.subr.bf16.mxu1 %v4093_v8 }
 0x1cd   : > { %3827 = vmatpush3.bf16.msra.mxu0 %v4094_v9 }
 0x1ce   : > { %3849 = vmatpush3.bf16.msra.mxu1 %v4095_v10  ;;  %3828 = vmatprep.subr.bf16.mxu0 %v4096_v11 }
 0x1cf   : > { %3850 = vmatprep.subr.bf16.mxu1 %v4097_v12 }
 0x1d1   : > { %3829 = vmatpush3.bf16.msra.mxu0 %v4098_v13 }
 0x1d2   : > { %3851 = vmatpush3.bf16.msra.mxu1 %v4099_v14  ;;  %3830 = vmatprep.subr.bf16.mxu0 %v4100_v15 }
 0x1d3   : > { %3852 = vmatprep.subr.bf16.mxu1 %v4101_v16 }
 0x1d5   : > { %3831 = vmatpush3.bf16.msra.mxu0 %v4102_v17  ;;  %v669_v17 = vld [vmem:[#allocation2] sm:$0x3f] }
 0x1d6   : > { %3853 = vmatpush3.bf16.msra.mxu1 %v4103_v18  ;;  %3832 = vmatprep.subr.bf16.mxu0 %v4104_v19 }
 0x1d7   : > { %3854 = vmatprep.subr.bf16.mxu1 %v4105_v20  ;;  %v4114_v20 = vld [vmem:[#allocation9 + $0x4] ss:$16 sps:$4 sm:$0xff] (!%p3599_p3)  }
 0x1d9   : > { %3833 = vmatpush3.bf16.msra.mxu0 %v4106_v21  ;;  %v4116_v21 = vld [vmem:[#allocation9 + $0xc] ss:$16 sps:$4 sm:$0xff] (!%p3599_p3)  }
 0x1da   : > { %3855 = vmatpush3.bf16.msra.mxu1 %v4107_v22  ;;  %3834 = vmatprep.subr.bf16.mxu0 %v4108_v23  ;;  %v4507_v22 = vmov (!%p3599_p3), 0   ;;  %v4118_v23 = vld [vmem:[#allocation9] ss:$16 sps:$4 sm:$0xff] (!%p3599_p3)  }
 0x1db   : > { %3856 = vmatprep.subr.bf16.mxu1 %v4109_v25  ;;  %v4119_v25 = vld [vmem:[#allocation9 + $0x8] ss:$16 sps:$4 sm:$0xff] (!%p3599_p3)   ;;  %4113 = vset.pattern.permute.xlu0 (!%p3599_p3), %v4507_v22 }
 0x1dc   : > { %4112 = vset.pattern.permute.xlu1 (!%p3599_p3), %v4507_v22 }
 0x1dd   : > { %3835 = vmatpush3.bf16.msra.mxu0 %v4110_v26  ;;  %v4120_v26 = vld [vmem:[#allocation9 + $0x24] ss:$16 sps:$4 sm:$0xff] (!%p3599_p3)  }
 0x1de   : > { %3857 = vmatpush3.bf16.msra.mxu1 %v4111_v27  ;;  %2277 = vmatprep.subr.bf16.mxu0 (!%p3599_p3), %v4114_v20  ;;  %v4122_v27 = vld [vmem:[#allocation9 + $0x2c] ss:$16 sps:$4 sm:$0xff] (!%p3599_p3)   ;;  %v5095_v20 = vld [vmem:[#allocation10 + $0xc0] ss:$16 sps:$4 sm:$0xff] (!%p3599_p3)  }
 0x1df   : > { %2318 = vmatprep.subr.bf16.mxu1 (!%p3599_p3), %v4116_v21  ;;  %v5097_v21 = vld [vmem:[#allocation10 + $0xc8] ss:$16 sps:$4 sm:$0xff] (!%p3599_p3)  }
 0x1e0   : > { %1999 = vmatmul.mubr.bf16.vlgmr.msra.gmra.mrb[12].mxu0 %v698_v33  ;;  %v4131_v33 = vld [vmem:[#allocation9 + $0x48] ss:$16 sps:$4 sm:$0xff] (!%p3599_p3)  }
 0x1e1   : > { %2039 = vmatmul.mubr.bf16.vlgmr.msra.gmra.mrb[12].mxu1 %v700_v35  ;;  %2309 = vmatprep.mubr.bf16.mxu0 (!%p3599_p3), %v4507_v22  ;;  %v4134_v35 = vld [vmem:[#allocation9 + $0x6c] ss:$16 sps:$4 sm:$0xff] (!%p3599_p3)  }
 0x1e2   : > { %2350 = vmatprep.mubr.bf16.mxu1 (!%p3599_p3), %v4507_v22  ;;  %2278 = vmatpush1.bf16.msra.mxu0 (!%p3599_p3), %v4118_v23  ;;  %v5101_v23 = vld [vmem:[#allocation10 + $0xe4] ss:$16 sps:$4 sm:$0xff] (!%p3599_p3)  }
 0x1e3   : > { %2319 = vmatpush1.bf16.msra.mxu1 (!%p3599_p3), %v4119_v25  ;;  %2279 = vmatprep.subr.bf16.mxu0 (!%p3599_p3), %v4120_v26  ;;  %v5103_v25 = vld [vmem:[#allocation10 + $0xec] ss:$16 sps:$4 sm:$0xff] (!%p3599_p3)   ;;  %v5107_v26 = vld [vmem:[#allocation10 + $0xe0] ss:$16 sps:$4 sm:$0xff] (!%p3599_p3)  }
 0x1e4   : > { %2320 = vmatprep.subr.bf16.mxu1 (!%p3599_p3), %v4122_v27  ;;  %v5109_v27 = vld [vmem:[#allocation10 + $0xe8] ss:$16 sps:$4 sm:$0xff] (!%p3599_p3)  }
 0x1e6   : > { %2280 = vmatpush1.bf16.msra.mxu0 (!%p3599_p3), %v4124_v28 }
 0x1e7   : > { %2321 = vmatpush1.bf16.msra.mxu1 (!%p3599_p3), %v4125_v29  ;;  %2281 = vmatprep.subr.bf16.mxu0 (!%p3599_p3), %v4126_v30 }
 0x1e8   : > { %2322 = vmatprep.subr.bf16.mxu1 (!%p3599_p3), %v4128_v31 }
 0x1ea   : > { %2282 = vmatpush1.bf16.msra.mxu0 (!%p3599_p3), %v4130_v32 }
 0x1eb   : > { %2323 = vmatpush1.bf16.msra.mxu1 (!%p3599_p3), %v4131_v33  ;;  %2283 = vmatprep.subr.bf16.mxu0 (!%p3599_p3), %v4132_v34 }
 0x1ec   : > { %2324 = vmatprep.subr.bf16.mxu1 (!%p3599_p3), %v4134_v35 }
 0x253   : > { %v3704_v36 = vpop.f32.mrb[0].mxu0 }
 0x254   : > { %v3726_v37 = vpop.f32.mrb[0].mxu1  ;;  %v3705_v38 = vpop.f32.mrb[1].mxu0 }
 0x255   : > { %v3727_v39 = vpop.f32.mrb[1].mxu1  ;;  %v3706_v40 = vadd.f32 %v3705_v38, %v3704_v36  ;;  %v3707_v42 = vpop.f32.mrb[2].mxu0  ;;  %v4136_v36 = vld [vmem:[#allocation9 + $0x60] ss:$16 sps:$4 sm:$0xff] (!%p3599_p3)   ;;  %v4138_v38 = vld [vmem:[#allocation9 + $0x84] ss:$16 sps:$4 sm:$0xff] (!%p3599_p3)  }
 0x256   : > { %v3728_v41 = vadd.f32 %v3727_v39, %v3726_v37  ;;  %v3729_v43 = vpop.f32.mrb[2].mxu1  ;;  %v3708_v44 = vpop.f32.mrb[3].mxu0  ;;  %v4137_v37 = vld [vmem:[#allocation9 + $0x68] ss:$16 sps:$4 sm:$0xff] (!%p3599_p3)   ;;  %v4140_v39 = vld [vmem:[#allocation9 + $0x8c] ss:$16 sps:$4 sm:$0xff] (!%p3599_p3)   ;;  %2284 = vmatpush1.bf16.msra.mxu0 (!%p3599_p3), %v4136_v36  ;;  %v2097_v36 = vlaneseq (!%p3599_p3) }
 0x257   : > { %v3730_v45 = vpop.f32.mrb[3].mxu1  ;;  %2325 = vmatpush1.bf16.msra.mxu1 (!%p3599_p3), %v4137_v37  ;;  %v4144_v42 = vld [vmem:[#allocation9 + $0xa4] ss:$16 sps:$4 sm:$0xff] (!%p3599_p3)   ;;  %2285 = vmatprep.subr.bf16.mxu0 (!%p3599_p3), %v4138_v38  ;;  %v4146_v43 = vld [vmem:[#allocation9 + $0xac] ss:$16 sps:$4 sm:$0xff] (!%p3599_p3)  }
 0x258   : > { %v1801_v46 = vadd.f32 %v3728_v41, %v3706_v40  ;;  %v4142_v40 = vld [vmem:[#allocation9 + $0x80] ss:$16 sps:$4 sm:$0xff] (!%p3599_p3)   ;;  %v4143_v41 = vld [vmem:[#allocation9 + $0x88] ss:$16 sps:$4 sm:$0xff] (!%p3599_p3)   ;;  %2326 = vmatprep.subr.bf16.mxu1 (!%p3599_p3), %v4140_v39  ;;  %v5154_v37 = vshrl.u32 (!%p3599_p3), %v2097_v36, 7 }
 0x259   : > { %v4148_v44 = vld [vmem:[#allocation9 + $0xa0] ss:$16 sps:$4 sm:$0xff] (!%p3599_p3)   ;;  %v4149_v45 = vld [vmem:[#allocation9 + $0xa8] ss:$16 sps:$4 sm:$0xff] (!%p3599_p3)  }
 0x25a   : > { %2286 = vmatpush1.bf16.msra.mxu0 (!%p3599_p3), %v4142_v40  ;;  %v5157_v38 = vsub.s32 (!%p3599_p3), 0, %v5154_v37  ;;  %v2095_v39 = vld [vmem:[%s5285_s5] sm:$0xf] (!%p3599_p3)  ;;  %v5163_v40 = vsub.s32 (!%p3599_p3), 1, %v5154_v37 }
 0x25b   : > { %2327 = vmatpush1.bf16.msra.mxu1 (!%p3599_p3), %v4143_v41  ;;  %2287 = vmatprep.subr.bf16.mxu0 (!%p3599_p3), %v4144_v42 }
 0x25c   : > { %2328 = vmatprep.subr.bf16.mxu1 (!%p3599_p3), %v4146_v43  ;;  %v2100_v41 = vrot.slane (!%p3599_p3), %v2095_v39, %v5157_v38  ;;  %v2104_v42 = vrot.slane (!%p3599_p3), %v2095_v39, %v5163_v40  ;;  %v2111_v43 = vsub.s32 (!%p3599_p3), 3, %v5154_v37 }
 0x25e   : > { %2288 = vmatpush1.bf16.msra.mxu0 (!%p3599_p3), %v4148_v44 }
 0x25f   : > { %2329 = vmatpush1.bf16.msra.mxu1 (!%p3599_p3), %v4149_v45 }
 0x273   : > { %v3748_v47 = vpop.f32.mrb[4].mxu0 }
 0x274   : > { %v3770_v48 = vpop.f32.mrb[4].mxu1  ;;  %v3749_v24 = vpop.f32.mrb[5].mxu0 }
 0x275   : > { %v3750_v49 = vadd.f32 %v3749_v24, %v3748_v47  ;;  %v3771_v50 = vpop.f32.mrb[5].mxu1  ;;  %v3751_v51 = vpop.f32.mrb[6].mxu0  ;;  %v4152_v47 = vld [vmem:[#allocation9 + $0xcc] ss:$16 sps:$4 sm:$0xff] (!%p3599_p3)   ;;  %v3600_v24 = vld [vmem:[%s5282_s2] ss:$0 sm:$0xff] (!%p3599_p3) }
 0x276   : > { %v3772_v52 = vadd.f32 %v3771_v50, %v3770_v48  ;;  %v3773_v53 = vpop.f32.mrb[6].mxu1  ;;  %v3752_v1 = vpop.f32.mrb[7].mxu0  ;;  %v4154_v50 = vld [vmem:[#allocation9 + $0xc0] ss:$16 sps:$4 sm:$0xff] (!%p3599_p3)   ;;  %v4155_v51 = vld [vmem:[#allocation9 + $0xc8] ss:$16 sps:$4 sm:$0xff] (!%p3599_p3)   ;;  %2330 = vmatprep.subr.bf16.mxu1 (!%p3599_p3), %v4152_v47 }
 0x277   : > { %v1841_v54 = vadd.f32 %v3750_v49, %v1801_v46  ;;  %v3774_v55 = vpop.f32.mrb[7].mxu1  ;;  %v4150_v46 = vld [vmem:[#allocation9 + $0xc4] ss:$16 sps:$4 sm:$0xff] (!%p3599_p3)   ;;  %v4158_v53 = vld [vmem:[#allocation9 + $0xec] ss:$16 sps:$4 sm:$0xff] (!%p3599_p3)   ;;  %2331 = vmatpush1.bf16.msra.mxu1 (!%p3599_p3), %v4155_v51 }
 0x278   : > { %2289 = vmatprep.subr.bf16.mxu0 (!%p3599_p3), %v4150_v46  ;;  %v4161_v55 = vld [vmem:[#allocation9 + $0xe8] ss:$16 sps:$4 sm:$0xff] (!%p3599_p3)   ;;  %2332 = vmatprep.subr.bf16.mxu1 (!%p3599_p3), %v4158_v53 }
 0x279   : > { %v1881_v56 = vadd.f32 %v3772_v52, %v1841_v54  ;;  %v4156_v52 = vld [vmem:[#allocation9 + $0xe4] ss:$16 sps:$4 sm:$0xff] (!%p3599_p3)   ;;  %2290 = vmatpush1.bf16.msra.mxu0 (!%p3599_p3), %v4154_v50  ;;  %v4160_v54 = vld [vmem:[#allocation9 + $0xe0] ss:$16 sps:$4 sm:$0xff] (!%p3599_p3)   ;;  %v2112_v50 = vrot.slane (!%p3599_p3), %v2095_v39, %v2111_v43 }
 0x27a   : > { %2291 = vmatprep.subr.bf16.mxu0 (!%p3599_p3), %v4156_v52 }
 0x27b   : > { %2333 = vmatpush1.bf16.msra.mxu1 (!%p3599_p3), %v4161_v55 }
 0x27d   : > { %2292 = vmatpush1.bf16.msra.mxu0 (!%p3599_p3), %v4160_v54 }
 0x293   : > { %v3792_v57 = vpop.f32.mrb[8].mxu0 }
 0x294   : > { %v3814_v58 = vpop.f32.mrb[8].mxu1  ;;  %v3793_v59 = vpop.f32.mrb[9].mxu0 }
 0x295   : > { %v3794_v60 = vadd.f32 %v3793_v59, %v3792_v57  ;;  %v3815_v61 = vpop.f32.mrb[9].mxu1  ;;  %v3795_v62 = vpop.f32.mrb[10].mxu0  ;;  %v5019_v57 = vld [vmem:[#allocation10 + $0xc] ss:$16 sps:$4 sm:$0xff] (!%p3599_p3)   ;;  %v5021_v59 = vld [vmem:[#allocation10] ss:$16 sps:$4 sm:$0xff] (!%p3599_p3)  }
 0x296   : > { %v3816_v63 = vadd.f32 %v3815_v61, %v3814_v58  ;;  %v3817_v0 = vpop.f32.mrb[10].mxu1  ;;  %v3796_v2 = vpop.f32.mrb[11].mxu0  ;;  %2592 = vmatprep.subr.bf16.mxu1 (!%p3599_p3), %v5019_v57  ;;  %v5027_v61 = vld [vmem:[#allocation10 + $0x24] ss:$16 sps:$4 sm:$0xff] (!%p3599_p3)   ;;  %v5029_v62 = vld [vmem:[#allocation10 + $0x2c] ss:$16 sps:$4 sm:$0xff] (!%p3599_p3)  }
 0x297   : > { %v1921_v3 = vadd.f32 %v3794_v60, %v1881_v56  ;;  %v3818_v4 = vpop.f32.mrb[11].mxu1  ;;  %v5017_v56 = vld [vmem:[#allocation10 + $0x4] ss:$16 sps:$4 sm:$0xff] (!%p3599_p3)   ;;  %v5023_v60 = vld [vmem:[#allocation10 + $0x8] ss:$16 sps:$4 sm:$0xff] (!%p3599_p3)  }
 0x298   : > { %2551 = vmatprep.subr.bf16.mxu0 (!%p3599_p3), %v5017_v56  ;;  %v5035_v0 = vld [vmem:[#allocation10 + $0x28] ss:$16 sps:$4 sm:$0xff] (!%p3599_p3)   ;;  %v5039_v2 = vld [vmem:[#allocation10 + $0x44] ss:$16 sps:$4 sm:$0xff] (!%p3599_p3)   ;;  %v5047_v4 = vld [vmem:[#allocation10 + $0x40] ss:$16 sps:$4 sm:$0xff] (!%p3599_p3)  }
 0x299   : > { %v1961_v5 = vadd.f32 %v3816_v63, %v1921_v3  ;;  %v5033_v63 = vld [vmem:[#allocation10 + $0x20] ss:$16 sps:$4 sm:$0xff] (!%p3599_p3)   ;;  %v5041_v3 = vld [vmem:[#allocation10 + $0x4c] ss:$16 sps:$4 sm:$0xff] (!%p3599_p3)  }
 0x2b3   : > { %v3836_v6 = vpop.f32.mrb[12].mxu0 }
 0x2b4   : > { %v3858_v7 = vpop.f32.mrb[12].mxu1  ;;  %v3837_v8 = vpop.f32.mrb[13].mxu0 }
 0x2b5   : > { %v3859_v9 = vpop.f32.mrb[13].mxu1  ;;  %v3838_v10 = vadd.f32 %v3837_v8, %v3836_v6  ;;  %v3839_v12 = vpop.f32.mrb[14].mxu0  ;;  %v5053_v6 = vld [vmem:[#allocation10 + $0x64] ss:$16 sps:$4 sm:$0xff] (!%p3599_p3)   ;;  %v5057_v8 = vld [vmem:[#allocation10 + $0x60] ss:$16 sps:$4 sm:$0xff] (!%p3599_p3)  }
 0x2b6   : > { %v3860_v11 = vadd.f32 %v3859_v9, %v3858_v7  ;;  %v3861_v13 = vpop.f32.mrb[14].mxu1  ;;  %v3840_v14 = vpop.f32.mrb[15].mxu0  ;;  %v5055_v7 = vld [vmem:[#allocation10 + $0x6c] ss:$16 sps:$4 sm:$0xff] (!%p3599_p3)   ;;  %v5059_v9 = vld [vmem:[#allocation10 + $0x68] ss:$16 sps:$4 sm:$0xff] (!%p3599_p3)  }
 0x2b7   : > { %v3862_v15 = vpop.f32.mrb[15].mxu1  ;;  %v2001_v16 = vadd.f32 %v3838_v10, %v1961_v5  ;;  %2051 = sbr.rel (%p3599_p3) target bundleno = 2505 (0x9c9), region = 80  ;;  %v5049_v5 = vld [vmem:[#allocation10 + $0x48] ss:$16 sps:$4 sm:$0xff] (!%p3599_p3)   ;;  %v5061_v10 = vld [vmem:[#allocation10 + $0x84] ss:$16 sps:$4 sm:$0xff] (!%p3599_p3)  }
 0x2b8   : > { %v5069_v12 = vld [vmem:[#allocation10 + $0x80] ss:$16 sps:$4 sm:$0xff] (!%p3599_p3)   ;;  %v5071_v13 = vld [vmem:[#allocation10 + $0x88] ss:$16 sps:$4 sm:$0xff] (!%p3599_p3)   ;;  %v5077_v14 = vld [vmem:[#allocation10 + $0xa4] ss:$16 sps:$4 sm:$0xff] (!%p3599_p3)  }
 0x2b9   : > { %v2041_v18 = vadd.f32 %v3860_v11, %v2001_v16  ;;  %v5063_v11 = vld [vmem:[#allocation10 + $0x8c] ss:$16 sps:$4 sm:$0xff] (!%p3599_p3)   ;;  %v5083_v16 = vld [vmem:[#allocation10 + $0xa0] ss:$16 sps:$4 sm:$0xff] (!%p3599_p3)  }
 0x2ba   : > { %v5079_v15 = vld [vmem:[#allocation10 + $0xac] ss:$16 sps:$4 sm:$0xff] (!%p3599_p3)  }
 0x2bb   : > { %v2046_v19 = vadd.f32 %v2041_v18, %v669_v17  ;;  %v5085_v17 = vld [vmem:[#allocation10 + $0xa8] ss:$16 sps:$4 sm:$0xff] (!%p3599_p3)   ;;  %v5089_v18 = vld [vmem:[#allocation10 + $0xc4] ss:$16 sps:$4 sm:$0xff] (!%p3599_p3)  }
 0x2bd   : > { %2047 = vst [vmem:[#allocation2] sm:$0x3f] %v2046_v19  ;;  %v5091_v19 = vld [vmem:[#allocation10 + $0xcc] ss:$16 sps:$4 sm:$0xff] (!%p3599_p3)  }
 0x2c4   : > { %v2052_v48 = vld [vmem:[#allocation2] sm:$0x3f] }
 0x2c5   : > { %v2060_v49 = vadd.f32 %v3600_v24, %v2052_v48 }
 0x2c7   : > { %v2061_v1 = vmax.f32 %v2060_v49, 0.0 }
 0x2c9   : > { %v2062_v58 = vpack.c.bf16 %v2061_v1, %v2061_v1  ;;  %v2107_v1 = vsub.s32 2, %v5154_v37 }
 0x2cb   : > { %2310 = vmatmul.mubr.bf16.vlgmr.msra.gmra.mrb[0].mxu0 %v2062_v58  ;;  %2351 = vmatmul.mubr.bf16.vlgmr.msra.gmra.mrb[0].mxu1 %v2062_v58 }
 0x2cc   : > { %2552 = vmatpush1.bf16.msra.mxu0 %v5021_v59  ;;  %2593 = vmatpush1.bf16.msra.mxu1 %v5023_v60 }
 0x2cd   : > { %2553 = vmatprep.subr.bf16.mxu0 %v5027_v61  ;;  %2594 = vmatprep.subr.bf16.mxu1 %v5029_v62 }
 0x2ce   : > { %2583 = vmatprep.mubr.bf16.mxu0 %v4507_v22  ;;  %2624 = vmatprep.mubr.bf16.mxu1 %v4507_v22 }
 0x2d0   : > { %2554 = vmatpush1.bf16.msra.mxu0 %v5033_v63  ;;  %2595 = vmatpush1.bf16.msra.mxu1 %v5035_v0 }
 0x2d1   : > { %2555 = vmatprep.subr.bf16.mxu0 %v5039_v2  ;;  %2596 = vmatprep.subr.bf16.mxu1 %v5041_v3 }
 0x2d4   : > { %2556 = vmatpush1.bf16.msra.mxu0 %v5047_v4  ;;  %2597 = vmatpush1.bf16.msra.mxu1 %v5049_v5 }
 0x2d5   : > { %2557 = vmatprep.subr.bf16.mxu0 %v5053_v6  ;;  %2598 = vmatprep.subr.bf16.mxu1 %v5055_v7 }
 0x2d8   : > { %2558 = vmatpush1.bf16.msra.mxu0 %v5057_v8  ;;  %2599 = vmatpush1.bf16.msra.mxu1 %v5059_v9 }
 0x2d9   : > { %2559 = vmatprep.subr.bf16.mxu0 %v5061_v10  ;;  %2600 = vmatprep.subr.bf16.mxu1 %v5063_v11 }
 0x2dc   : > { %2560 = vmatpush1.bf16.msra.mxu0 %v5069_v12  ;;  %2601 = vmatpush1.bf16.msra.mxu1 %v5071_v13 }
 0x2dd   : > { %2561 = vmatprep.subr.bf16.mxu0 %v5077_v14  ;;  %2602 = vmatprep.subr.bf16.mxu1 %v5079_v15 }
 0x2e0   : > { %2562 = vmatpush1.bf16.msra.mxu0 %v5083_v16  ;;  %2603 = vmatpush1.bf16.msra.mxu1 %v5085_v17 }
 0x2e1   : > { %2563 = vmatprep.subr.bf16.mxu0 %v5089_v18  ;;  %2604 = vmatprep.subr.bf16.mxu1 %v5091_v19 }
 0x2e4   : > { %2564 = vmatpush1.bf16.msra.mxu0 %v5095_v20  ;;  %2605 = vmatpush1.bf16.msra.mxu1 %v5097_v21 }
 0x2e5   : > { %2565 = vmatprep.subr.bf16.mxu0 %v5101_v23  ;;  %2606 = vmatprep.subr.bf16.mxu1 %v5103_v25 }
 0x2e8   : > { %2566 = vmatpush1.bf16.msra.mxu0 %v5107_v26  ;;  %2607 = vmatpush1.bf16.msra.mxu1 %v5109_v27 }
 0x2e9   : > { %2662 = vmatprep.subr.bf16.mxu0 %v5017_v56  ;;  %2703 = vmatprep.subr.bf16.mxu1 %v5019_v57 }
 0x2eb   : > { %2584 = vmatmul.mubr.bf16.vlgmr.msra.gmra.mrb[4].mxu0 %v4507_v22  ;;  %2625 = vmatmul.mubr.bf16.vlgmr.msra.gmra.mrb[4].mxu1 %v4507_v22 }
 0x2ec   : > { %2663 = vmatpush1.bf16.msra.mxu0 %v5021_v59  ;;  %2704 = vmatpush1.bf16.msra.mxu1 %v5023_v60 }
 0x2ed   : > { %2664 = vmatprep.subr.bf16.mxu0 %v5027_v61  ;;  %2705 = vmatprep.subr.bf16.mxu1 %v5029_v62 }
 0x2ee   : > { %2694 = vmatprep.mubr.bf16.mxu0 %v4507_v22  ;;  %2735 = vmatprep.mubr.bf16.mxu1 %v4507_v22 }
 0x2f0   : > { %2665 = vmatpush1.bf16.msra.mxu0 %v5033_v63  ;;  %2706 = vmatpush1.bf16.msra.mxu1 %v5035_v0 }
 0x2f1   : > { %2666 = vmatprep.subr.bf16.mxu0 %v5039_v2  ;;  %2707 = vmatprep.subr.bf16.mxu1 %v5041_v3 }
 0x2f4   : > { %2667 = vmatpush1.bf16.msra.mxu0 %v5047_v4  ;;  %2708 = vmatpush1.bf16.msra.mxu1 %v5049_v5 }
 0x2f5   : > { %2668 = vmatprep.subr.bf16.mxu0 %v5053_v6  ;;  %2709 = vmatprep.subr.bf16.mxu1 %v5055_v7 }
 0x2f8   : > { %2669 = vmatpush1.bf16.msra.mxu0 %v5057_v8  ;;  %2710 = vmatpush1.bf16.msra.mxu1 %v5059_v9 }
 0x2f9   : > { %2670 = vmatprep.subr.bf16.mxu0 %v5061_v10  ;;  %2711 = vmatprep.subr.bf16.mxu1 %v5063_v11 }
 0x2fc   : > { %2671 = vmatpush1.bf16.msra.mxu0 %v5069_v12  ;;  %2712 = vmatpush1.bf16.msra.mxu1 %v5071_v13 }
 0x2fd   : > { %2672 = vmatprep.subr.bf16.mxu0 %v5077_v14  ;;  %2713 = vmatprep.subr.bf16.mxu1 %v5079_v15 }
 0x300   : > { %2673 = vmatpush1.bf16.msra.mxu0 %v5083_v16  ;;  %2714 = vmatpush1.bf16.msra.mxu1 %v5085_v17 }
 0x301   : > { %2674 = vmatprep.subr.bf16.mxu0 %v5089_v18  ;;  %2715 = vmatprep.subr.bf16.mxu1 %v5091_v19 }
 0x304   : > { %2675 = vmatpush1.bf16.msra.mxu0 %v5095_v20  ;;  %2716 = vmatpush1.bf16.msra.mxu1 %v5097_v21 }
 0x305   : > { %2676 = vmatprep.subr.bf16.mxu0 %v5101_v23  ;;  %2717 = vmatprep.subr.bf16.mxu1 %v5103_v25 }
 0x308   : > { %2677 = vmatpush1.bf16.msra.mxu0 %v5107_v26  ;;  %2718 = vmatpush1.bf16.msra.mxu1 %v5109_v27 }
 0x309   : > { %2791 = vmatprep.subr.bf16.mxu0 %v5017_v56  ;;  %2832 = vmatprep.subr.bf16.mxu1 %v5019_v57 }
 0x39e   : > { %v2311_v28 = vpop.f32.mrb[0].mxu0  ;;  %v2352_v29 = vpop.f32.mrb[0].mxu1 }
 0x39f   : > { %v2313_v30 = vpop.f32.mrb[1].mxu0  ;;  %v2354_v31 = vpop.f32.mrb[1].mxu1  ;;  %v5168_v44 = vadd.f32 %v2311_v28, %v2100_v41  ;;  %v2108_v28 = vrot.slane %v2095_v39, %v2107_v1 }
 0x3a0   : > { %v2315_v32 = vpop.f32.mrb[2].mxu0  ;;  %v2356_v33 = vpop.f32.mrb[2].mxu1  ;;  %v5170_v45 = vadd.f32 %v2313_v30, %v2104_v42  ;;  %v5175_v58 = vadd.f32 %v2354_v31, %v2112_v50 }
 0x3a1   : > { %v2316_v34 = vpop.f32.mrb[3].mxu0  ;;  %v2357_v35 = vpop.f32.mrb[3].mxu1  ;;  %v5178_v32 = vadd.f32 %v2352_v29, %v2108_v28 }
 0x3be   : > { %v2585_v46 = vpop.f32.mrb[4].mxu0  ;;  %v2626_v47 = vpop.f32.mrb[4].mxu1 }
 0x3bf   : > { %v2633_v48 = vadd.f32 %v2585_v46, %v5168_v44  ;;  %v2587_v24 = vpop.f32.mrb[5].mxu0  ;;  %v2628_v49 = vpop.f32.mrb[5].mxu1  ;;  %v2635_v34 = vadd.f32 %v2626_v47, %v5178_v32 }
 0x3c0   : > { %v2634_v51 = vadd.f32 %v2587_v24, %v5170_v45  ;;  %v2589_v52 = vpop.f32.mrb[6].mxu0  ;;  %v2630_v53 = vpop.f32.mrb[6].mxu1  ;;  %v2636_v30 = vadd.f32 %v2628_v49, %v5175_v58 }
 0x3c1   : > { %v3665_v54 = vmul.f32 -1.442695, %v2633_v48  ;;  %v2590_v55 = vpop.f32.mrb[7].mxu0  ;;  %v2631_v56 = vpop.f32.mrb[7].mxu1 }
 0x3c2   : > { %v3666_v57 = vmul.f32 -1.442695, %v2634_v51  ;;  %v3667_v33 = vmul.f32 -1.442695, %v2636_v30  ;;  %v4210_v30 = vld [vmem:[#allocation12] sm:$0xff]  }
 0x3c3   : > { %4219 = vpow2.f32 %v3665_v54 }
 0x3c4   : > { %4221 = vpow2.f32 %v3666_v57 }
 0x3c5   : > { %4223 = vpow2.f32 %v3667_v33  ;;  %v4508_v33 = vmov 0.0  }
 0x3c6   : > { %4225 = vtanh.f32 %v2635_v34  ;;  %v4211_v34 = vld [vmem:[#allocation12 + $0x8] sm:$0xff]  }
 0x3cd   : > { %v4220_v35 = vpop.eup %4219 }
 0x3ce   : > { %v4222_v41 = vpop.eup %4221  ;;  %v2640_v42 = vadd.f32 1.0, %v4220_v35  ;;  %v4212_v35 = vld [vmem:[#allocation12 + $0x10] sm:$0xff]  }
 0x3cf   : > { %v2646_v43 = vadd.f32 1.0, %v4222_v41  ;;  %v4224_v46 = vpop.eup %4223  ;;  %v4213_v41 = vld [vmem:[#allocation12 + $0x18] sm:$0xff]  }
 0x3d0   : > { %4227 = vrcp.f32 %v2640_v42  ;;  %v4226_v31 = vpop.eup %4225  ;;  %v2653_v50 = vadd.f32 1.0, %v4224_v46  ;;  %v4214_v42 = vld [vmem:[#allocation12 + $0x20] sm:$0xff]   ;;  %v4216_v46 = vld [vmem:[#allocation12 + $0x30] sm:$0xff]  }
 0x3d1   : > { %4229 = vrcp.f32 %v2646_v43  ;;  %v4215_v43 = vld [vmem:[#allocation12 + $0x28] sm:$0xff]  }
 0x3d2   : > { %4231 = vrcp.f32 %v2653_v50 }
 0x3da   : > { %v4228_v48 = vpop.eup %4227 }
 0x3db   : > { %v4230_v24 = vpop.eup %4229  ;;  %v2657_v39 = vmul.f32 %v4228_v48, %v4226_v31  ;;  %v4217_v31 = vld [vmem:[#allocation12 + $0x38] sm:$0xff]  }
 0x3dc   : > { %v2656_v49 = vmul.f32 0.0, %v4230_v24  ;;  %v4232_v47 = vpop.eup %4231 }
 0x3de   : > { %v5181_v29 = vadd.f32 %v2657_v39, %v2656_v49 }
 0x3e0   : > { %4233 = vtanh.f32 %v5181_v29 }
 0x3ea   : > { %v4234_v51 = vpop.eup %4233 }
 0x3eb   : > { %v2660_v52 = vmul.f32 %v4234_v51, %v4232_v47 }
 0x3ed   : > { %v2661_v53 = vpack.c.bf16 %v2660_v52, %v2660_v52 }
 0x3ef   : > { %2695 = vmatmul.mubr.bf16.vlgmr.msra.gmra.mrb[8].mxu0 %v2661_v53  ;;  %2736 = vmatmul.mubr.bf16.vlgmr.msra.gmra.mrb[8].mxu1 %v2661_v53 }
 0x3f0   : > { %2792 = vmatpush1.bf16.msra.mxu0 %v5021_v59  ;;  %2833 = vmatpush1.bf16.msra.mxu1 %v5023_v60 }
 0x3f1   : > { %2793 = vmatprep.subr.bf16.mxu0 %v5027_v61  ;;  %2834 = vmatprep.subr.bf16.mxu1 %v5029_v62 }
 0x3f2   : > { %2823 = vmatprep.mubr.bf16.mxu0 %v4507_v22  ;;  %2864 = vmatprep.mubr.bf16.mxu1 %v4507_v22 }
 0x3f4   : > { %2794 = vmatpush1.bf16.msra.mxu0 %v5033_v63  ;;  %2835 = vmatpush1.bf16.msra.mxu1 %v5035_v0 }
 0x3f5   : > { %2795 = vmatprep.subr.bf16.mxu0 %v5039_v2  ;;  %2836 = vmatprep.subr.bf16.mxu1 %v5041_v3 }
 0x3f8   : > { %2796 = vmatpush1.bf16.msra.mxu0 %v5047_v4  ;;  %2837 = vmatpush1.bf16.msra.mxu1 %v5049_v5 }
 0x3f9   : > { %2797 = vmatprep.subr.bf16.mxu0 %v5053_v6  ;;  %2838 = vmatprep.subr.bf16.mxu1 %v5055_v7 }
 0x3fc   : > { %2798 = vmatpush1.bf16.msra.mxu0 %v5057_v8  ;;  %2839 = vmatpush1.bf16.msra.mxu1 %v5059_v9 }
 0x3fd   : > { %2799 = vmatprep.subr.bf16.mxu0 %v5061_v10  ;;  %2840 = vmatprep.subr.bf16.mxu1 %v5063_v11 }
 0x400   : > { %2800 = vmatpush1.bf16.msra.mxu0 %v5069_v12  ;;  %2841 = vmatpush1.bf16.msra.mxu1 %v5071_v13 }
 0x401   : > { %2801 = vmatprep.subr.bf16.mxu0 %v5077_v14  ;;  %2842 = vmatprep.subr.bf16.mxu1 %v5079_v15 }
 0x404   : > { %2802 = vmatpush1.bf16.msra.mxu0 %v5083_v16  ;;  %2843 = vmatpush1.bf16.msra.mxu1 %v5085_v17 }
 0x405   : > { %2803 = vmatprep.subr.bf16.mxu0 %v5089_v18  ;;  %2844 = vmatprep.subr.bf16.mxu1 %v5091_v19 }
 0x408   : > { %2804 = vmatpush1.bf16.msra.mxu0 %v5095_v20  ;;  %2845 = vmatpush1.bf16.msra.mxu1 %v5097_v21  ;;  %v2780_v21 = vrot.slane %v5181_v29, 6 }
 0x409   : > { %2805 = vmatprep.subr.bf16.mxu0 %v5101_v23  ;;  %2846 = vmatprep.subr.bf16.mxu1 %v5103_v25 }
 0x40c   : > { %2806 = vmatpush1.bf16.msra.mxu0 %v5107_v26  ;;  %2847 = vmatpush1.bf16.msra.mxu1 %v5109_v27 }
 0x40d   : > { %3873 = vmatprep.subr.bf16.mxu0 %v4508_v33 }
 0x4c2   : > { %v2696_v22 = vpop.f32.mrb[8].mxu0  ;;  %v2737_v59 = vpop.f32.mrb[8].mxu1 }
 0x4c3   : > { %v2748_v60 = vrot.slane %v2696_v22, 6  ;;  %v2698_v61 = vpop.f32.mrb[9].mxu0  ;;  %v2739_v62 = vpop.f32.mrb[9].mxu1  ;;  %v2750_v11 = vrot.slane %v2737_v59, 6 }
 0x4c4   : > { %v2749_v63 = vrot.slane %v2698_v61, 6  ;;  %v2700_v0 = vpop.f32.mrb[10].mxu0  ;;  %v2741_v2 = vpop.f32.mrb[10].mxu1  ;;  %v2751_v9 = vrot.slane %v2739_v62, 6 }
 0x4c5   : > { %v2756_v3 = vadd.f32 %v2748_v60, %v5168_v44  ;;  %v2701_v4 = vpop.f32.mrb[11].mxu0  ;;  %v2742_v5 = vpop.f32.mrb[11].mxu1  ;;  %v2758_v13 = vadd.f32 %v2750_v11, %v5178_v32 }
 0x4c6   : > { %v2757_v6 = vadd.f32 %v2749_v63, %v5170_v45  ;;  %v2759_v10 = vadd.f32 %v2751_v9, %v5175_v58 }
 0x4c7   : > { %v3668_v7 = vmul.f32 -1.442695, %v2756_v3 }
 0x4c8   : > { %v3669_v8 = vmul.f32 -1.442695, %v2757_v6  ;;  %v3670_v12 = vmul.f32 -1.442695, %v2759_v10 }
 0x4c9   : > { %4235 = vpow2.f32 %v3668_v7 }
 0x4ca   : > { %4237 = vpow2.f32 %v3669_v8 }
 0x4cb   : > { %4239 = vpow2.f32 %v3670_v12 }
 0x4cc   : > { %4241 = vtanh.f32 %v2758_v13 }
 0x4d3   : > { %v4236_v14 = vpop.eup %4235 }
 0x4d4   : > { %v4238_v15 = vpop.eup %4237  ;;  %v2763_v16 = vadd.f32 1.0, %v4236_v14 }
 0x4d5   : > { %v2769_v17 = vadd.f32 1.0, %v4238_v15  ;;  %v4240_v18 = vpop.eup %4239 }
 0x4d6   : > { %4243 = vrcp.f32 %v2763_v16  ;;  %v4242_v19 = vpop.eup %4241  ;;  %v2776_v26 = vadd.f32 1.0, %v4240_v18  ;;  %v4510_v18 = vmov 1966171168  }
 0x4d7   : > { %4245 = vrcp.f32 %v2769_v17 }
 0x4d8   : > { %4247 = vrcp.f32 %v2776_v26 }
 0x4e0   : > { %v4244_v20 = vpop.eup %4243 }
 0x4e1   : > { %v4246_v23 = vpop.eup %4245  ;;  %v2783_v25 = vmul.f32 %v4244_v20, %v4242_v19  ;;  %v3028_v19 = vunpack.c.l.s4 %v4510_v18 }
 0x4e2   : > { %v2782_v27 = vmul.f32 %v4246_v23, %v2780_v21  ;;  %v4248_v54 = vpop.eup %4247  ;;  %v3024_v21 = vld [vmem:[#allocation3] sm:$0x3f] }
 0x4e3   : > { %v3029_v20 = vunpack.c.0.s8 %v3028_v19 }
 0x4e4   : > { %v5221_v1 = vadd.f32 %v2783_v25, %v2782_v27  ;;  %v3026_v25 = vcombine.high %v3024_v21, %v3024_v21 }
 0x4e5   : > { %v3032_v23 = vsub.s32 %v3029_v20, %v5154_v37 }
 0x4e6   : > { %4249 = vtanh.f32 %v5221_v1  ;;  %v2909_v9 = vrot.slane %v5221_v1, 6 }
 0x4e7   : > { %v3033_v26 = vrot.slane %v3024_v21, %v3032_v23 }
 0x4f0   : > { %v4250_v55 = vpop.eup %4249 }
 0x4f1   : > { %v2786_v56 = vmul.f32 %v4250_v55, %v4248_v54 }
 0x4f3   : > { %v2787_v57 = vpack.c.bf16 %v2786_v56, %v2786_v56  ;;  %v3041_v56 = vcombine.high %v3033_v26, %v3033_v26 }
 0x4f5   : > { %v2789_v28 = vrot.slane %v2787_v57, 1  ;;  %v3040_v57 = vrot.slane %v3026_v25, %v3032_v23 }
 0x4f7   : > { %2824 = vmatmul.mubr.bf16.vlgmr.msra.gmra.mrb[12].mxu0 %v2789_v28  ;;  %2865 = vmatmul.mubr.bf16.vlgmr.msra.gmra.mrb[12].mxu1 %v2789_v28 }
 0x4f8   : > { %3874 = vmatpush3.bf16.msra.mxu0 %v4210_v30  ;;  %3889 = vmatprep.mubr.msk.bf16.mxu0 %vm4509_vm14, %v4508_v33 }
 0x4f9   : > { %3875 = vmatprep.subr.bf16.mxu0 %v4508_v33 }
 0x4fc   : > { %3876 = vmatpush3.bf16.msra.mxu0 %v4211_v34 }
 0x4fd   : > { %3877 = vmatprep.subr.bf16.mxu0 %v4508_v33 }
 0x500   : > { %3878 = vmatpush3.bf16.msra.mxu0 %v4212_v35 }
 0x501   : > { %3879 = vmatprep.subr.bf16.mxu0 %v4508_v33 }
 0x504   : > { %3880 = vmatpush3.bf16.msra.mxu0 %v4213_v41  ;;  %v3049_v41 = vrot.slane %v3033_v26, %v3032_v23 }
 0x505   : > { %3881 = vmatprep.subr.bf16.mxu0 %v4508_v33 }
 0x508   : > { %3882 = vmatpush3.bf16.msra.mxu0 %v4214_v42  ;;  %v3063_v42 = vrot.slane %v3041_v56, %v3032_v23 }
 0x509   : > { %3883 = vmatprep.subr.bf16.mxu0 %v4508_v33 }
 0x50c   : > { %3884 = vmatpush3.bf16.msra.mxu0 %v4215_v43  ;;  %v3042_v43 = vcombine.high %v3040_v57, %v3040_v57 }
 0x50d   : > { %3885 = vmatprep.subr.bf16.mxu0 %v4508_v33 }
 0x510   : > { %3886 = vmatpush3.bf16.msra.mxu0 %v4216_v46 }
 0x511   : > { %3887 = vmatprep.subr.bf16.mxu0 %v4508_v33 }
 0x514   : > { %3888 = vmatpush3.bf16.msra.mxu0 %v4217_v31 }
 0x5ca   : > { %v2825_v48 = vpop.f32.mrb[12].mxu0  ;;  %v2866_v24 = vpop.f32.mrb[12].mxu1 }
 0x5cb   : > { %v2877_v39 = vrot.slane %v2825_v48, 4  ;;  %v2827_v50 = vpop.f32.mrb[13].mxu0  ;;  %v2868_v49 = vpop.f32.mrb[13].mxu1  ;;  %v2879_v0 = vrot.slane %v2866_v24, 4 }
 0x5cc   : > { %v2878_v29 = vrot.slane %v2827_v50, 4  ;;  %v2829_v47 = vpop.f32.mrb[14].mxu0  ;;  %v2870_v51 = vpop.f32.mrb[14].mxu1  ;;  %v2880_v62 = vrot.slane %v2868_v49, 4  ;;  %v3071_v50 = vcombine.high %v3049_v41, %v3049_v41  ;;  %v3056_v49 = vrot.slane %v3040_v57, %v3032_v23 }
 0x5cd   : > { %v2885_v52 = vadd.f32 %v2877_v39, %v5168_v44  ;;  %v2830_v53 = vpop.f32.mrb[15].mxu0  ;;  %v2871_v22 = vpop.f32.mrb[15].mxu1  ;;  %v2887_v3 = vadd.f32 %v2879_v0, %v5178_v32  ;;  %v3072_v47 = vcombine.high %v3063_v42, %v3063_v42 }
 0x5ce   : > { %v2886_v59 = vadd.f32 %v2878_v29, %v5170_v45  ;;  %v2888_v63 = vadd.f32 %v2880_v62, %v5175_v58  ;;  %v3070_v29 = vrot.slane %v3042_v43, %v3032_v23 }
 0x5cf   : > { %v3671_v60 = vmul.f32 -1.442695, %v2885_v52 }
 0x5d0   : > { %v3672_v61 = vmul.f32 -1.442695, %v2886_v59  ;;  %v3673_v2 = vmul.f32 -1.442695, %v2888_v63 }
 0x5d1   : > { %4251 = vpow2.f32 %v3671_v60 }
 0x5d2   : > { %4253 = vpow2.f32 %v3672_v61 }
 0x5d3   : > { %4255 = vpow2.f32 %v3673_v2 }
 0x5d4   : > { %4257 = vtanh.f32 %v2887_v3 }
 0x5db   : > { %v4252_v4 = vpop.eup %4251 }
 0x5dc   : > { %v4254_v5 = vpop.eup %4253  ;;  %v2892_v6 = vadd.f32 1.0, %v4252_v4 }
 0x5dd   : > { %v2898_v44 = vadd.f32 1.0, %v4254_v5  ;;  %v4256_v45 = vpop.eup %4255 }
 0x5de   : > { %4259 = vrcp.f32 %v2892_v6  ;;  %v4258_v7 = vpop.eup %4257  ;;  %v2905_v58 = vadd.f32 1.0, %v4256_v45 }
 0x5df   : > { %4261 = vrcp.f32 %v2898_v44 }
 0x5e0   : > { %4263 = vrcp.f32 %v2905_v58 }
 0x5e8   : > { %v4260_v8 = vpop.eup %4259 }
 0x5e9   : > { %v4262_v10 = vpop.eup %4261  ;;  %v2912_v11 = vmul.f32 %v4260_v8, %v4258_v7 }
 0x5ea   : > { %v2911_v12 = vmul.f32 %v4262_v10, %v2909_v9  ;;  %v4264_v32 = vpop.eup %4263 }
 0x5ec   : > { %v2913_v13 = vadd.f32 %v2912_v11, %v2911_v12 }
 0x5ee   : > { %4265 = vtanh.f32 %v2913_v13  ;;  %v3232_v13 = vand.u32 127, %v2097_v36 }
 0x5f8   : > { %v4266_v14 = vpop.eup %4265 }
 0x5f9   : > { %v2915_v15 = vmul.f32 %v4266_v14, %v4264_v32  ;;  %v3235_v14 = vsub.s32 %v3232_v13, %v5154_v37 }
 0x5fb   : > { %v2916_v16 = vpack.c.bf16 %v2915_v15, %v2915_v15 }
 0x5fd   : > { %v2934_v17 = vrot.slane %v2916_v16, 2 }
 0x5ff   : > { %3890 = vmatmul.mubr.bf16.vlgmr.msra.gmra.mrb[16].mxu0 %v2934_v17 }
 0x6d2   : > { %v3018_v27 = vpop.f32.mrb[16].mxu0 }
 0x6d3   : > { %v3086_v1 = vrot.slane %v3018_v27, %v3032_v23  ;;  %v3891_v54 = vpop.f32.mrb[17].mxu0 }
 0x6d4   : > { %v3021_v55 = vpop.f32.mrb[18].mxu0 }
 0x6d5   : > { %v3087_v28 = vcombine.high %v3086_v1, %v3086_v1  ;;  %v3094_v30 = vrot.slane %v3086_v1, %v3032_v23  ;;  %v3892_v33 = vpop.f32.mrb[19].mxu0 }
 0x6d7   : > { %v3101_v34 = vrot.slane %v3087_v28, %v3032_v23  ;;  %v3105_v35 = vrot.slane %v3094_v30, %v5157_v38 }
 0x6d9   : > { %v3109_v46 = vrot.slane %v3101_v34, %v5157_v38  ;;  %v3116_v31 = vrot.slane %v3105_v35, %v3032_v23 }
 0x6db   : > { %v3117_v48 = vcombine.high %v3116_v31, %v3116_v31  ;;  %v3124_v24 = vrot.slane %v3116_v31, %v3032_v23  ;;  %v3139_v39 = vrot.slane %v3109_v46, %v3032_v23 }
 0x6dd   : > { %v3131_v51 = vrot.slane %v3117_v48, %v3032_v23  ;;  %v3140_v52 = vcombine.high %v3139_v39, %v3139_v39  ;;  %v3147_v53 = vrot.slane %v3139_v39, %v3032_v23  ;;  %v3132_v22 = vcombine.high %v3124_v24, %v3124_v24 }
 0x6de   : > { %v3162_v59 = vmul.f32 %v3124_v24, %v3049_v41 }
 0x6df   : > { %v3163_v60 = vmul.f32 %v3131_v51, %v3063_v42  ;;  %v3164_v61 = vmul.f32 %v3132_v22, %v3071_v50  ;;  %v3154_v62 = vrot.slane %v3140_v52, %v3032_v23  ;;  %v3155_v63 = vcombine.high %v3147_v53, %v3147_v53 }
 0x6e0   : > { %v3165_v2 = vmul.f32 %v3147_v53, %v3072_v47 }
 0x6e1   : > { %v3174_v0 = vcombine.low %v3162_v59, %v3163_v60  ;;  %v3166_v3 = vmul.f32 %v3154_v62, %v3056_v49  ;;  %v3167_v4 = vmul.f32 %v3155_v63, %v3070_v29  ;;  %v3188_v6 = vrot.slane %v3164_v61, %v3032_v23 }
 0x6e3   : > { %v3181_v5 = vrot.slane %v3174_v0, %v3032_v23  ;;  %v3197_v44 = vcombine.low %v3165_v2, %v3166_v3  ;;  %v3211_v8 = vrot.slane %v3167_v4, %v3032_v23 }
 0x6e5   : > { %v3189_v45 = vcombine.low %v3181_v5, %v3188_v6  ;;  %v3204_v7 = vrot.slane %v3197_v44, %v3032_v23 }
 0x6e7   : > { %v3196_v9 = vrot.slane %v3189_v45, %v3032_v23  ;;  %v3212_v10 = vcombine.low %v3204_v7, %v3211_v8 }
 0x6e9   : > { %v3223_v11 = vsel %vm3222_vm15, %v3196_v9, 0.0  ;;  %v3219_v58 = vrot.slane %v3212_v10, %v3032_v23 }
 0x6ea   : > { %3224 = vadd.xlane.f32.xlu0 %v3223_v11 }
 0x6eb   : > { %v3226_v12 = vsel %vm3222_vm15, %v3219_v58, 0.0 }
 0x6ee   : > { %3227 = vadd.xlane.f32.xlu0 %v3226_v12 }
 0x777   : > { %v3225_v32 = vpop.xlane.xlu0 %3224 }
 0x778   : > { %v3236_v16 = vrot.slane %v3225_v32, %v3235_v14 }
 0x77b   : > { %v3228_v15 = vpop.xlane.xlu0 %3227 }
 0x77c   : > { %v3240_v17 = vrot.slane %v3228_v15, %v3235_v14 }
 0x77e   : > { %v3242_v18 = vsel %vm3241_vm0, %v3240_v17, %v3236_v16 }
 0x77f   : > { %v3245_v19 = vsel %vm3244_vm1, %v3242_v18, -inf }
 0x780   : > { %3246 = vmax.xlane.f32.xlu1 %v3245_v19 }
 0x80d   : > { %v3247_v20 = vpop.xlane.xlu1 %3246 }
 0x80e   : > { %v3252_v21 = vrot.slane %v3247_v20, %v5157_v38  ;;  %v3256_v23 = vrot.slane %v3247_v20, %v5163_v40 }
 0x810   : > { %v3259_v25 = vsub.f32 %v3225_v32, %v3252_v21  ;;  %v3260_v36 = vsub.f32 %v3228_v15, %v3256_v23 }
 0x812   : > { %v3261_v26 = vmul.f32 1.442695, %v3259_v25  ;;  %v3263_v27 = vmul.f32 1.442695, %v3260_v36 }
 0x814   : > { %4267 = vpow2.f32 %v3261_v26 }
 0x815   : > { %4269 = vpow2.f32 %v3263_v27 }
 0x81e   : > { %v4268_v37 = vpop.eup %4267 }
 0x81f   : > { %v4270_v1 = vpop.eup %4269  ;;  %3268 = vperm.xlu1 %4112, %v4268_v37  }
 0x820   : > { %3271 = vperm.xlu0 %4113, %v4270_v1  }
 0x89e   : > { %v3269_v54 = vpop.permute.xlu1 %3268 }
 0x89f   : > { %v3272_v55 = vpop.permute.xlu0 %3271  ;;  %v3276_v56 = vrot.slane %v3269_v54, %v3235_v14 }
 0x8a0   : > { %v3280_v57 = vrot.slane %v3272_v55, %v3235_v14 }
 0x8a2   : > { %v3281_v28 = vsel %vm3241_vm0, %v3280_v57, %v3276_v56 }
 0x8a3   : > { %v3283_v30 = vsel %vm3244_vm1, %v3281_v28, 0.0 }
 0x8a4   : > { %3284 = vadd.xlane.f32.xlu1 %v3283_v30 }
 0x931   : > { %v3285_v33 = vpop.xlane.xlu1 %3284 }
 0x932   : > { %v3290_v34 = vrot.slane %v3285_v33, %v5157_v38  ;;  %v3294_v35 = vrot.slane %v3285_v33, %v5163_v40 }
 0x934   : > { %4271 = vrcp.f32 %v3290_v34 }
 0x935   : > { %4273 = vrcp.f32 %v3294_v35 }
 0x93e   : > { %v4272_v41 = vpop.eup %4271 }
 0x93f   : > { %v3298_v42 = vmul.f32 %v4272_v41, %v4268_v37  ;;  %v4274_v43 = vpop.eup %4273 }
 0x940   : > { %v3300_v46 = vmul.f32 %v4274_v43, %v4270_v1 }
 0x941   : > { %3304 = vperm.xlu0 %4113, %v3298_v42  }
 0x945   : > { %3307 = vperm.xlu0 %4113, %v3300_v46  }
 0x9c0   : > { %v3305_v31 = vpop.permute.xlu0 %3304 }
 0x9c1   : > { %v3312_v24 = vrot.slane %v3305_v31, %v3235_v14 }
 0x9c4   : > { %v3308_v48 = vpop.permute.xlu0 %3307 }
 0x9c5   : > { %v3316_v39 = vrot.slane %v3308_v48, %v3235_v14 }
 0x9c7   : > { %v3317_v50 = vsel %vm3241_vm0, %v3316_v39, %v3312_v24 }
 0x9c8   : > { %3319 = vst.msk [vmem:[#allocation13] sm:$0x3] %vm3244_vm1, %v3317_v50 }
 0x9c9 PF: > { %p3937_p9 = scmp.eq.s32.totalorder %s4576_s9, 1  ;;  %s4511_s23 = smov [#allocation13]  }
 0x9ca   : > { %s3327_s27 = sshll.u32 %s4511_s23, 4  ;;  %s3328_s27 = int_to_ptr.vmem [resolvable:$true] %s3327_s27 }
 0x9cb   : > { %s4419_s0 = scalar_lea.vmem %s3328_s27, 32  ;;  %p4426_p5 = scmp.lt.s32.totalorder %s3328_s27, %s3328_s27 }
 0x9cc   : > { %p4420_p11 = scmp.ne.s32.totalorder %s3328_s27, %s4419_s0  ;;  %p4427_p6 = scmp.lt.s32.totalorder %s4419_s0, %s4419_s0 }
 0x9ce   : > { %p4421_p7 = pnand %p4420_p11, %p3937_p9  ;;  %p4428_p2 = por %p4427_p6, %p4426_p5 }
 0x9d0   : > { %p4422_p1 = pneg %p4421_p7 }
 0x9d2   : > { %p4429_p4 = pnand %p4428_p2, %p4422_p1 }
 0x9d4   : > { %4432 = shalt.err (!%p4429_p4)
}
 0x9d5   : > { %s4433_s14 = scalar_lea.hbm %s5288_s8, 32 }
 0x9d6   : > { %p4434_p8 = scmp.ne.s32.totalorder %s5288_s8, %s4433_s14  ;;  %p4439_p13 = scmp.lt.u32.totalorder %s4433_s14, %s5288_s8 }
 0x9d8   : > { %p4435_p10 = pnand %p4434_p8, %p3937_p9 }
 0x9da   : > { %p4436_p12 = pneg %p4435_p10 }
 0x9dc   : > { %p4441_p0 = pnand %p4439_p13, %p4436_p12 }
 0x9de   : > { %4444 = shalt.err (!%p4441_p0)
}
 0x9df   : > { %3910 = dma.vmem_to_hbm [thread:$0]  (%p3937_p9), %s3328_s27, 32, %s5288_s8, [#allocation6]  }
 0x9e0   : > { %4478 = dma.done.wait (%p3937_p9), [#allocation6], 32  }
 0x9e1   : > { %4480 = vsyncadd (%p3937_p9), [#allocation6], 4294967264 }
 0x9e2 PF: > { %p23_p3 = scmp.ge.s32.totalorder %s4682_s17, 4   ;;  %s5310_s27 = smov %s4487_s28 }
 0x9e3   : > { %s5311_s28 = smov %s4491_s29  ;;  %s5312_s29 = smov %s4692_s21 }
 0x9e4   : > { %s5313_s30 = smov %s4682_s17  ;;  %25 = sbr.rel (!%p23_p3) target bundleno = 9 (0x9), region = 122 }
 0x9eb   :  { %3340 = vsyncpa [#allocation5], 1 }
 0x9ec   :  { %3342 = vsyncpa [#allocation5 + $0x1], 1 }
 0x9ed   :  { %3343 = vsyncpa [#allocation8], 1 }
 0x9ee   :  { %3345 = vsyncpa [#allocation8 + $0x1], 1 }
 0x9ef   :  { %3346 = vsyncpa [#allocation11], 1 }
 0x9f0   :  { %3347 = vsyncpa [#allocation6], 1 }
 0x9f1   :  { %3349 = vsyncpa [#allocation6 + $0x1], 1 }

</bundles_post_ra>
